<compile_context>
chip_gen: v7x
topology: tpu7x:2x2x1
jax: 0.10.0
libtpu: 0.0.40
codegen_flags: <defaults>
</compile_context>

<pallas_src>
import functools

import jax
import jax.numpy as jnp
from jax.experimental import pallas as pl
from jax.experimental.pallas import tpu as pltpu


def _unet_output_kernel(x_ref, gamma_ref, beta_ref, gidc_ref, gidr_ref,
                        w_ref, bias_ref, rc_ref, o_ref, ab_ref, stat_ref,
                        *, cpg, eps, H, W, c_chunk):
    C, HW = x_ref.shape
    Cout = o_ref.shape[0]
    n_cchunk = C // c_chunk
    cnt = float(HW * cpg)                       # elements per group

    def crows(i):
        if n_cchunk == 1:
            return slice(None)
        return pl.ds(pl.multiple_of(i * c_chunk, c_chunk), c_chunk)

    def over_chunks(body):
        if n_cchunk == 1:
            body(0, 0)
        else:
            jax.lax.fori_loop(0, n_cchunk, body, 0)

    # Same-group averaging matrix from precomputed channel->group ids
    # (no in-kernel iota / integer division).
    gavg = (gidc_ref[...] == gidr_ref[...]).astype(jnp.float32) * (1.0 / cnt)

    # ---- Pass 1: per-channel sums (f32) -> group mean ---------------------
    def sum_body(i, carry):
        sl = crows(i)
        xc = x_ref[sl, :].astype(jnp.float32)
        stat_ref[sl, 0:1] = jnp.sum(xc, axis=1, keepdims=True)
        return carry
    over_chunks(sum_body)

    mean = jnp.dot(gavg, stat_ref[:, 0:1],
                   preferred_element_type=jnp.float32)          # (C, 1)
    stat_ref[:, 2:3] = mean

    # ---- Pass 2: group variance (two-pass, no E[x^2]-mean^2) --------------
    def var_body(i, carry):
        sl = crows(i)
        d = x_ref[sl, :].astype(jnp.float32) - stat_ref[sl, 2:3]
        stat_ref[sl, 1:2] = jnp.sum(d * d, axis=1, keepdims=True)
        return carry
    over_chunks(var_body)

    var = jnp.dot(gavg, stat_ref[:, 1:2],
                  preferred_element_type=jnp.float32)           # (C, 1)
    inv = jax.lax.rsqrt(var + eps)
    scale = inv * gamma_ref[...]                                # (C, 1)
    shift = beta_ref[...] - mean * scale                        # (C, 1)
    stat_ref[:, 3:4] = scale
    stat_ref[:, 4:5] = shift

    # ---- Pass 3: normalize + SiLU -> bf16 activation scratch --------------
    # SiLU kept in f32 so the kernel also stays efficient on v5e.
    def act_body(i, carry):
        sl = crows(i)
        a = (x_ref[sl, :].astype(jnp.float32) * stat_ref[sl, 3:4]
             + stat_ref[sl, 4:5])
        ab_ref[sl, :] = (a * jax.nn.sigmoid(a)).astype(jnp.bfloat16)
        return carry
    over_chunks(act_body)

    # ---- 3x3 conv (padding=1): 9 shifted matmuls, no im2col ---------------
    hh = rc_ref[0:1, :]                          # (1, HW) row of each flat pos
    ww = rc_ref[1:2, :]                          # (1, HW) col of each flat pos
    row_ok = (hh >= 1, None, hh <= H - 2)        # source row valid, ky = 0,1,2
    col_ok = (ww >= 1, None, ww <= W - 2)        # source col valid, kx = 0,1,2

    ab = ab_ref[...]                             # (C, HW) bf16 (MXU operand)
    acc = jnp.zeros((Cout, HW), jnp.float32)
    for ky in range(3):
        for kx in range(3):
            r = jnp.dot(w_ref[ky * 3 + kx], ab,
                        preferred_element_type=jnp.float32)     # (Cout, HW)
            s = (ky - 1) * W + (kx - 1)          # flat offset of the source tap
            if s != 0:
                r = pltpu.roll(r, shift=(-s) % HW, axis=1)      # XLU rotate
            m = row_ok[ky]
            if col_ok[kx] is not None:
                m = col_ok[kx] if m is None else (m & col_ok[kx])
            if m is not None:
                r = jnp.where(m, r, 0.0)         # zero taps falling off-image
            acc = acc + r
    o_ref[...] = (acc + bias_ref[...]).astype(o_ref.dtype)      # lane-dense


def unet_output_layer(x, gamma, beta, conv_w, conv_b, num_groups=32, eps=1e-5):
    """Fused GroupNorm(num_groups) -> SiLU -> Conv2d(3x3, padding=1).

    x: (B, C_in, H, W) NCHW (PyTorch layout). Returns (B, C_out, H, W) f32.
    Passing x as bf16 halves the kernel's HBM read; statistics are always
    accumulated in f32 inside the kernel.
    """
    B, C, H, W = x.shape
    Cout = conv_w.shape[0]
    assert conv_w.shape == (Cout, C, 3, 3)
    assert C % num_groups == 0
    cpg = C // num_groups
    HW = H * W

    # Channel-chunk the GroupNorm / SiLU passes so the in-kernel f32
    # temporaries are bounded for large C * H * W.
    c_chunk = C
    if C > 64:
        for cand in (64, 32, 16, 8):
            if C % cand == 0:
                c_chunk = cand
                break

    xr = x.reshape(B, C, HW)                            # metadata-only reshape
    gamma2 = gamma.astype(jnp.float32).reshape(C, 1)
    beta2 = beta.astype(jnp.float32).reshape(C, 1)
    # Channel -> group id, as a column and a row (builds the (C,C) group mask
    # in-kernel with a broadcasted compare, no iota/division).
    gid = jnp.arange(C, dtype=jnp.int32) // cpg
    gidc = gid.reshape(C, 1)
    gidr = gid.reshape(1, C)
    # Conv weights, tap-major: (Cout, C, 3, 3) -> (9, Cout, C), bf16 for MXU.
    w9 = jnp.transpose(conv_w, (2, 3, 0, 1)).reshape(9, Cout, C)
    w9 = w9.astype(jnp.bfloat16)
    bias2 = conv_b.astype(jnp.float32).reshape(Cout, 1)
    # Row / col index of every flattened spatial position (boundary masks).
    pos = jnp.arange(HW, dtype=jnp.int32)
    rc = jnp.stack([pos // W, pos % W], axis=0)         # (2, HW) int32

    # VMEM budget from the actual footprint, capped by the device capacity
    # (no hard 64 MiB clamp on 128 MiB parts).
    xbytes = jnp.dtype(x.dtype).itemsize
    est = (2 * C * HW * xbytes                 # x block (double-buffered)
           + C * HW * 2                        # bf16 activation scratch
           + 2 * Cout * HW * 4                 # output block (double-buffered)
           + 3 * c_chunk * HW * 4              # f32 GN/SiLU chunk temporaries
           + 3 * max(Cout, 8) * HW * 4         # conv tap result + accumulator
           + C * C * 4                         # group-averaging matrix
           + 2 * (9 * Cout * C * 2 + 10 * C * 4 + 2 * HW * 4 + Cout * 4))
    try:
        vmem_cap = pltpu.get_tpu_info().vmem_capacity_bytes
    except Exception:
        vmem_cap = 64 * 1024 * 1024
    vmem_limit = int(min(max(2 * est, 32 * 1024 * 1024), int(0.9 * vmem_cap)))

    kernel = functools.partial(_unet_output_kernel, cpg=cpg, eps=float(eps),
                               H=H, W=W, c_chunk=c_chunk)

    out = pl.pallas_call(
        kernel,
        out_shape=jax.ShapeDtypeStruct((B, Cout, HW), jnp.float32),
        grid=(B,),
        in_specs=[
            pl.BlockSpec((None, C, HW), lambda b: (b, 0, 0)),   # x
            pl.BlockSpec((C, 1), lambda b: (0, 0)),             # gamma
            pl.BlockSpec((C, 1), lambda b: (0, 0)),             # beta
            pl.BlockSpec((C, 1), lambda b: (0, 0)),             # group id (col)
            pl.BlockSpec((1, C), lambda b: (0, 0)),             # group id (row)
            pl.BlockSpec((9, Cout, C), lambda b: (0, 0, 0)),    # conv taps
            pl.BlockSpec((Cout, 1), lambda b: (0, 0)),          # conv bias
            pl.BlockSpec((2, HW), lambda b: (0, 0)),            # row/col index
        ],
        out_specs=pl.BlockSpec((None, Cout, HW), lambda b: (b, 0, 0)),
        scratch_shapes=[
            pltpu.VMEM((C, HW), jnp.bfloat16),                  # activation
            pltpu.VMEM((C, 8), jnp.float32),                    # GN statistics
        ],
        compiler_params=pltpu.CompilerParams(
            dimension_semantics=("parallel",),
            vmem_limit_bytes=vmem_limit),
    )(xr, gamma2, beta2, gidc, gidr, w9, bias2, rc)

    return out.reshape(B, Cout, H, W)


def _reference(x, gamma, beta, conv_w, conv_b, num_groups=32, eps=1e-5):
    """Pure-JAX f32 reference matching the PyTorch module (NCHW)."""
    B, C, H, W = x.shape
    xg = x.reshape(B, num_groups, C // num_groups, H, W)
    mean = xg.mean(axis=(2, 3, 4), keepdims=True)
    var = xg.var(axis=(2, 3, 4), keepdims=True)
    xn = ((xg - mean) / jnp.sqrt(var + eps)).reshape(B, C, H, W)
    xn = xn * gamma[None, :, None, None] + beta[None, :, None, None]
    a = xn * jax.nn.sigmoid(xn)
    out = jax.lax.conv_general_dilated(
        a, conv_w, window_strides=(1, 1), padding="SAME",
        dimension_numbers=("NCHW", "OIHW", "NCHW"))
    return out + conv_b[None, :, None, None]


if __name__ == "__main__":
    def _run_case(key, B, C_in, C_out, H, W):
        kx, kg, kb, kw, kc = jax.random.split(key, 5)
        x = jax.random.normal(kx, (B, C_in, H, W), jnp.float32)
        gamma = 1.0 + 0.1 * jax.random.normal(kg, (C_in,), jnp.float32)
        beta = 0.1 * jax.random.normal(kb, (C_in,), jnp.float32)
        conv_w = 0.05 * jax.random.normal(kw, (C_out, C_in, 3, 3), jnp.float32)
        conv_b = 0.1 * jax.random.normal(kc, (C_out,), jnp.float32)

        out = unet_output_layer(x, gamma, beta, conv_w, conv_b)
        out = jax.block_until_ready(out)

        ref = _reference(x, gamma, beta, conv_w, conv_b)
        assert out.shape == (B, C_out, H, W), out.shape
        err = float(jnp.max(jnp.abs(out - ref)))
        # Tolerance covers the intentional bf16 cast of the conv matmul
        # operands (accumulation is f32); GroupNorm/SiLU stay f32.
        assert jnp.allclose(out, ref, atol=5e-2, rtol=5e-2), err

    key = jax.random.PRNGKey(0)
    k1, k2 = jax.random.split(key)
    # Single channel-chunk path (C_in <= 64).
    _run_case(k1, B=2, C_in=64, C_out=8, H=16, W=16)
    # Chunked GroupNorm/SiLU path (C_in=96 -> 3 chunks), cpg=3 and C_out
    # not a multiple of 8.
    _run_case(k2, B=1, C_in=96, C_out=4, H=16, W=16)

    print("KERNEL_OK")
</pallas_src>

<mosaic_0001>
module attributes {stable_mosaic.version = 11 : i64} {
  func.func @_unet_output_kernel(%arg0: i32, %arg1: memref<1x64x256xf32, #tpu.memory_space<vmem>>, %arg2: memref<64x1xf32, #tpu.memory_space<vmem>>, %arg3: memref<64x1xf32, #tpu.memory_space<vmem>>, %arg4: memref<64x1xi32, #tpu.memory_space<vmem>>, %arg5: memref<1x64xi32, #tpu.memory_space<vmem>>, %arg6: memref<9x8x64xbf16, #tpu.memory_space<vmem>>, %arg7: memref<8x1xf32, #tpu.memory_space<vmem>>, %arg8: memref<2x256xi32, #tpu.memory_space<vmem>>, %arg9: memref<1x8x256xf32, #tpu.memory_space<vmem>>, %arg10: memref<64x256xbf16, #tpu.memory_space<vmem>>, %arg11: memref<64x8xf32, #tpu.memory_space<vmem>>) attributes {dimension_semantics = [#tpu.dimension_semantics<parallel>], iteration_bounds = array<i64: 2>, scalar_prefetch = 0 : i64, scratch_operands = 2 : i64, tpu.core_type = #tpu.core_type<tc>, window_params = [{transform_indices = @transform_0, window_bounds = array<i64: 1, 64, 256>}, {pipeline_mode = #tpu.pipeline_mode<synchronous>, transform_indices = @transform_1, window_bounds = array<i64: 64, 1>}, {pipeline_mode = #tpu.pipeline_mode<synchronous>, transform_indices = @transform_2, window_bounds = array<i64: 64, 1>}, {pipeline_mode = #tpu.pipeline_mode<synchronous>, transform_indices = @transform_3, window_bounds = array<i64: 64, 1>}, {pipeline_mode = #tpu.pipeline_mode<synchronous>, transform_indices = @transform_4, window_bounds = array<i64: 1, 64>}, {pipeline_mode = #tpu.pipeline_mode<synchronous>, transform_indices = @transform_5, window_bounds = array<i64: 9, 8, 64>}, {pipeline_mode = #tpu.pipeline_mode<synchronous>, transform_indices = @transform_6, window_bounds = array<i64: 8, 1>}, {pipeline_mode = #tpu.pipeline_mode<synchronous>, transform_indices = @transform_7, window_bounds = array<i64: 2, 256>}, {transform_indices = @transform_8, window_bounds = array<i64: 1, 8, 256>}]} {
    %c0 = arith.constant 0 : index
    %c0_0 = arith.constant 0 : index
    %0 = vector.load %arg4[%c0, %c0_0] : memref<64x1xi32, #tpu.memory_space<vmem>>, vector<64x1xi32>
    %c0_1 = arith.constant 0 : index
    %c0_2 = arith.constant 0 : index
    %1 = vector.load %arg5[%c0_1, %c0_2] : memref<1x64xi32, #tpu.memory_space<vmem>>, vector<1x64xi32>
    %2 = vector.broadcast %0 : vector<64x1xi32> to vector<64x64xi32>
    %3 = vector.broadcast %1 : vector<1x64xi32> to vector<64x64xi32>
    %4 = arith.cmpi eq, %2, %3 : vector<64x64xi32>
    %5 = arith.extui %4 : vector<64x64xi1> to vector<64x64xi32>
    %6 = arith.sitofp %5 : vector<64x64xi32> to vector<64x64xf32>
    %cst = arith.constant 0.001953125 : f32
    %7 = vector.broadcast %cst : f32 to vector<64x64xf32>
    %8 = arith.mulf %6, %7 : vector<64x64xf32>
    %c0_3 = arith.constant 0 : index
    %c0_4 = arith.constant 0 : index
    %c0_5 = arith.constant 0 : index
    %9 = vector.load %arg1[%c0_3, %c0_4, %c0_5] : memref<1x64x256xf32, #tpu.memory_space<vmem>>, vector<1x64x256xf32>
    %10 = vector.shape_cast %9 : vector<1x64x256xf32> to vector<64x256xf32>
    %cst_6 = arith.constant dense<0.000000e+00> : vector<64xf32>
    %11 = vector.multi_reduction <add>, %10, %cst_6 [1] : vector<64x256xf32> to vector<64xf32>
    %12 = vector.shape_cast %11 : vector<64xf32> to vector<64x1xf32>
    %c0_7 = arith.constant 0 : index
    %c0_8 = arith.constant 0 : index
    %13 = vector.load %arg11[%c0_7, %c0_8] : memref<64x8xf32, #tpu.memory_space<vmem>>, vector<64x1xf32>
    tpu.vector_store %arg11[%c0_7, %c0_8], %12 {strides = array<i32>} : memref<64x8xf32, #tpu.memory_space<vmem>>, vector<64x1xf32>,
    %c0_9 = arith.constant 0 : index
    %c0_10 = arith.constant 0 : index
    %14 = vector.load %arg11[%c0_9, %c0_10] : memref<64x8xf32, #tpu.memory_space<vmem>>, vector<64x1xf32>
    %cst_11 = arith.constant dense<0.000000e+00> : vector<64x1xf32>
    %15 = tpu.matmul %8, %14, %cst_11 {dimension_numbers = #tpu.dot_dimension_numbers<[1], [0], [0], [1], [0, 0, 1, 1], [], []>} : vector<64x64xf32>, vector<64x1xf32>, vector<64x1xf32> -> vector<64x1xf32>
    %c0_12 = arith.constant 0 : index
    %c2 = arith.constant 2 : index
    %16 = vector.load %arg11[%c0_12, %c2] : memref<64x8xf32, #tpu.memory_space<vmem>>, vector<64x1xf32>
    tpu.vector_store %arg11[%c0_12, %c2], %15 {strides = array<i32>} : memref<64x8xf32, #tpu.memory_space<vmem>>, vector<64x1xf32>,
    %c0_13 = arith.constant 0 : index
    %c0_14 = arith.constant 0 : index
    %c0_15 = arith.constant 0 : index
    %17 = vector.load %arg1[%c0_13, %c0_14, %c0_15] : memref<1x64x256xf32, #tpu.memory_space<vmem>>, vector<1x64x256xf32>
    %18 = vector.shape_cast %17 : vector<1x64x256xf32> to vector<64x256xf32>
    %c0_16 = arith.constant 0 : index
    %c2_17 = arith.constant 2 : index
    %19 = vector.load %arg11[%c0_16, %c2_17] : memref<64x8xf32, #tpu.memory_space<vmem>>, vector<64x1xf32>
    %20 = vector.broadcast %19 : vector<64x1xf32> to vector<64x256xf32>
    %21 = arith.subf %18, %20 : vector<64x256xf32>
    %22 = arith.mulf %21, %21 : vector<64x256xf32>
    %cst_18 = arith.constant dense<0.000000e+00> : vector<64xf32>
    %23 = vector.multi_reduction <add>, %22, %cst_18 [1] : vector<64x256xf32> to vector<64xf32>
    %24 = vector.shape_cast %23 : vector<64xf32> to vector<64x1xf32>
    %c0_19 = arith.constant 0 : index
    %c1 = arith.constant 1 : index
    %25 = vector.load %arg11[%c0_19, %c1] : memref<64x8xf32, #tpu.memory_space<vmem>>, vector<64x1xf32>
    tpu.vector_store %arg11[%c0_19, %c1], %24 {strides = array<i32>} : memref<64x8xf32, #tpu.memory_space<vmem>>, vector<64x1xf32>,
    %c0_20 = arith.constant 0 : index
    %c1_21 = arith.constant 1 : index
    %26 = vector.load %arg11[%c0_20, %c1_21] : memref<64x8xf32, #tpu.memory_space<vmem>>, vector<64x1xf32>
    %cst_22 = arith.constant dense<0.000000e+00> : vector<64x1xf32>
    %27 = tpu.matmul %8, %26, %cst_22 {dimension_numbers = #tpu.dot_dimension_numbers<[1], [0], [0], [1], [0, 0, 1, 1], [], []>} : vector<64x64xf32>, vector<64x1xf32>, vector<64x1xf32> -> vector<64x1xf32>
    %cst_23 = arith.constant 9.99999974E-6 : f32
    %28 = vector.broadcast %cst_23 : f32 to vector<64x1xf32>
    %29 = arith.addf %27, %28 : vector<64x1xf32>
    %30 = math.rsqrt %29 : vector<64x1xf32>
    %c0_24 = arith.constant 0 : index
    %c0_25 = arith.constant 0 : index
    %31 = vector.load %arg2[%c0_24, %c0_25] : memref<64x1xf32, #tpu.memory_space<vmem>>, vector<64x1xf32>
    %32 = arith.mulf %30, %31 : vector<64x1xf32>
    %c0_26 = arith.constant 0 : index
    %c0_27 = arith.constant 0 : index
    %33 = vector.load %arg3[%c0_26, %c0_27] : memref<64x1xf32, #tpu.memory_space<vmem>>, vector<64x1xf32>
    %34 = arith.mulf %15, %32 : vector<64x1xf32>
    %35 = arith.subf %33, %34 : vector<64x1xf32>
    %c0_28 = arith.constant 0 : index
    %c3 = arith.constant 3 : index
    %36 = vector.load %arg11[%c0_28, %c3] : memref<64x8xf32, #tpu.memory_space<vmem>>, vector<64x1xf32>
    tpu.vector_store %arg11[%c0_28, %c3], %32 {strides = array<i32>} : memref<64x8xf32, #tpu.memory_space<vmem>>, vector<64x1xf32>,
    %c0_29 = arith.constant 0 : index
    %c4 = arith.constant 4 : index
    %37 = vector.load %arg11[%c0_29, %c4] : memref<64x8xf32, #tpu.memory_space<vmem>>, vector<64x1xf32>
    tpu.vector_store %arg11[%c0_29, %c4], %35 {strides = array<i32>} : memref<64x8xf32, #tpu.memory_space<vmem>>, vector<64x1xf32>,
    %c0_30 = arith.constant 0 : index
    %c0_31 = arith.constant 0 : index
    %c0_32 = arith.constant 0 : index
    %38 = vector.load %arg1[%c0_30, %c0_31, %c0_32] : memref<1x64x256xf32, #tpu.memory_space<vmem>>, vector<1x64x256xf32>
    %39 = vector.shape_cast %38 : vector<1x64x256xf32> to vector<64x256xf32>
    %c0_33 = arith.constant 0 : index
    %c3_34 = arith.constant 3 : index
    %40 = vector.load %arg11[%c0_33, %c3_34] : memref<64x8xf32, #tpu.memory_space<vmem>>, vector<64x1xf32>
    %41 = vector.broadcast %40 : vector<64x1xf32> to vector<64x256xf32>
    %42 = arith.mulf %39, %41 : vector<64x256xf32>
    %c0_35 = arith.constant 0 : index
    %c4_36 = arith.constant 4 : index
    %43 = vector.load %arg11[%c0_35, %c4_36] : memref<64x8xf32, #tpu.memory_space<vmem>>, vector<64x1xf32>
    %44 = vector.broadcast %43 : vector<64x1xf32> to vector<64x256xf32>
    %45 = arith.addf %42, %44 : vector<64x256xf32>
    %46 = arith.negf %45 : vector<64x256xf32>
    %47 = math.exp %46 : vector<64x256xf32>
    %cst_37 = arith.constant 1.000000e+00 : f32
    %48 = vector.broadcast %cst_37 : f32 to vector<64x256xf32>
    %49 = arith.addf %48, %47 : vector<64x256xf32>
    %50 = arith.divf %48, %49 : vector<64x256xf32>
    %51 = arith.mulf %45, %50 : vector<64x256xf32>
    %52 = arith.truncf %51 : vector<64x256xf32> to vector<64x256xbf16>
    %c0_38 = arith.constant 0 : index
    %c0_39 = arith.constant 0 : index
    %53 = vector.load %arg10[%c0_38, %c0_39] : memref<64x256xbf16, #tpu.memory_space<vmem>>, vector<64x256xbf16>
    tpu.vector_store %arg10[%c0_38, %c0_39], %52 {strides = array<i32>} : memref<64x256xbf16, #tpu.memory_space<vmem>>, vector<64x256xbf16>,
    %c0_40 = arith.constant 0 : index
    %c0_41 = arith.constant 0 : index
    %54 = vector.load %arg8[%c0_40, %c0_41] : memref<2x256xi32, #tpu.memory_space<vmem>>, vector<1x256xi32>
    %c1_42 = arith.constant 1 : index
    %c0_43 = arith.constant 0 : index
    %55 = vector.load %arg8[%c1_42, %c0_43] : memref<2x256xi32, #tpu.memory_space<vmem>>, vector<1x256xi32>
    %c1_i32 = arith.constant 1 : i32
    %56 = vector.broadcast %c1_i32 : i32 to vector<1x256xi32>
    %57 = arith.cmpi sge, %54, %56 : vector<1x256xi32>
    %c14_i32 = arith.constant 14 : i32
    %58 = vector.broadcast %c14_i32 : i32 to vector<1x256xi32>
    %59 = arith.cmpi sle, %54, %58 : vector<1x256xi32>
    %c1_i32_44 = arith.constant 1 : i32
    %60 = vector.broadcast %c1_i32_44 : i32 to vector<1x256xi32>
    %61 = arith.cmpi sge, %55, %60 : vector<1x256xi32>
    %c14_i32_45 = arith.constant 14 : i32
    %62 = vector.broadcast %c14_i32_45 : i32 to vector<1x256xi32>
    %63 = arith.cmpi sle, %55, %62 : vector<1x256xi32>
    %c0_46 = arith.constant 0 : index
    %c0_47 = arith.constant 0 : index
    %64 = vector.load %arg10[%c0_46, %c0_47] : memref<64x256xbf16, #tpu.memory_space<vmem>>, vector<64x256xbf16>
    %cst_48 = arith.constant 0.000000e+00 : f32
    %65 = vector.broadcast %cst_48 : f32 to vector<8x256xf32>
    %c0_49 = arith.constant 0 : index
    %c0_50 = arith.constant 0 : index
    %c0_51 = arith.constant 0 : index
    %66 = vector.load %arg6[%c0_49, %c0_50, %c0_51] : memref<9x8x64xbf16, #tpu.memory_space<vmem>>, vector<1x8x64xbf16>
    %67 = vector.shape_cast %66 : vector<1x8x64xbf16> to vector<8x64xbf16>
    %cst_52 = arith.constant dense<0.000000e+00> : vector<8x256xf32>
    %68 = tpu.matmul %67, %64, %cst_52 {dimension_numbers = #tpu.dot_dimension_numbers<[1], [0], [0], [1], [0, 0, 1, 1], [], []>} : vector<8x64xbf16>, vector<64x256xbf16>, vector<8x256xf32> -> vector<8x256xf32>
    %c17_i32 = arith.constant 17 : i32
    %69 = tpu.dynamic_rotate %68 by %c17_i32 dim 1 : vector<8x256xf32>, i32 -> vector<8x256xf32>
    %70 = arith.andi %57, %61 : vector<1x256xi1>
    %cst_53 = arith.constant 0.000000e+00 : f32
    %71 = vector.shape_cast %70 : vector<1x256xi1> to vector<1x256xi1>
    %72 = vector.broadcast %71 : vector<1x256xi1> to vector<8x256xi1>
    %73 = vector.broadcast %cst_53 : f32 to vector<8x256xf32>
    %74 = arith.select %72, %69, %73 : vector<8x256xi1>, vector<8x256xf32>
    %75 = arith.addf %65, %74 : vector<8x256xf32>
    %c1_54 = arith.constant 1 : index
    %c0_55 = arith.constant 0 : index
    %c0_56 = arith.constant 0 : index
    %76 = vector.load %arg6[%c1_54, %c0_55, %c0_56] : memref<9x8x64xbf16, #tpu.memory_space<vmem>>, vector<1x8x64xbf16>
    %77 = vector.shape_cast %76 : vector<1x8x64xbf16> to vector<8x64xbf16>
    %cst_57 = arith.constant dense<0.000000e+00> : vector<8x256xf32>
    %78 = tpu.matmul %77, %64, %cst_57 {dimension_numbers = #tpu.dot_dimension_numbers<[1], [0], [0], [1], [0, 0, 1, 1], [], []>} : vector<8x64xbf16>, vector<64x256xbf16>, vector<8x256xf32> -> vector<8x256xf32>
    %c16_i32 = arith.constant 16 : i32
    %79 = tpu.dynamic_rotate %78 by %c16_i32 dim 1 : vector<8x256xf32>, i32 -> vector<8x256xf32>
    %cst_58 = arith.constant 0.000000e+00 : f32
    %80 = vector.shape_cast %57 : vector<1x256xi1> to vector<1x256xi1>
    %81 = vector.broadcast %80 : vector<1x256xi1> to vector<8x256xi1>
    %82 = vector.broadcast %cst_58 : f32 to vector<8x256xf32>
    %83 = arith.select %81, %79, %82 : vector<8x256xi1>, vector<8x256xf32>
    %84 = arith.addf %75, %83 : vector<8x256xf32>
    %c2_59 = arith.constant 2 : index
    %c0_60 = arith.constant 0 : index
    %c0_61 = arith.constant 0 : index
    %85 = vector.load %arg6[%c2_59, %c0_60, %c0_61] : memref<9x8x64xbf16, #tpu.memory_space<vmem>>, vector<1x8x64xbf16>
    %86 = vector.shape_cast %85 : vector<1x8x64xbf16> to vector<8x64xbf16>
    %cst_62 = arith.constant dense<0.000000e+00> : vector<8x256xf32>
    %87 = tpu.matmul %86, %64, %cst_62 {dimension_numbers = #tpu.dot_dimension_numbers<[1], [0], [0], [1], [0, 0, 1, 1], [], []>} : vector<8x64xbf16>, vector<64x256xbf16>, vector<8x256xf32> -> vector<8x256xf32>
    %c15_i32 = arith.constant 15 : i32
    %88 = tpu.dynamic_rotate %87 by %c15_i32 dim 1 : vector<8x256xf32>, i32 -> vector<8x256xf32>
    %89 = arith.andi %57, %63 : vector<1x256xi1>
    %cst_63 = arith.constant 0.000000e+00 : f32
    %90 = vector.shape_cast %89 : vector<1x256xi1> to vector<1x256xi1>
    %91 = vector.broadcast %90 : vector<1x256xi1> to vector<8x256xi1>
    %92 = vector.broadcast %cst_63 : f32 to vector<8x256xf32>
    %93 = arith.select %91, %88, %92 : vector<8x256xi1>, vector<8x256xf32>
    %94 = arith.addf %84, %93 : vector<8x256xf32>
    %c3_64 = arith.constant 3 : index
    %c0_65 = arith.constant 0 : index
    %c0_66 = arith.constant 0 : index
    %95 = vector.load %arg6[%c3_64, %c0_65, %c0_66] : memref<9x8x64xbf16, #tpu.memory_space<vmem>>, vector<1x8x64xbf16>
    %96 = vector.shape_cast %95 : vector<1x8x64xbf16> to vector<8x64xbf16>
    %cst_67 = arith.constant dense<0.000000e+00> : vector<8x256xf32>
    %97 = tpu.matmul %96, %64, %cst_67 {dimension_numbers = #tpu.dot_dimension_numbers<[1], [0], [0], [1], [0, 0, 1, 1], [], []>} : vector<8x64xbf16>, vector<64x256xbf16>, vector<8x256xf32> -> vector<8x256xf32>
    %c1_i32_68 = arith.constant 1 : i32
    %98 = tpu.dynamic_rotate %97 by %c1_i32_68 dim 1 : vector<8x256xf32>, i32 -> vector<8x256xf32>
    %cst_69 = arith.constant 0.000000e+00 : f32
    %99 = vector.shape_cast %61 : vector<1x256xi1> to vector<1x256xi1>
    %100 = vector.broadcast %99 : vector<1x256xi1> to vector<8x256xi1>
    %101 = vector.broadcast %cst_69 : f32 to vector<8x256xf32>
    %102 = arith.select %100, %98, %101 : vector<8x256xi1>, vector<8x256xf32>
    %103 = arith.addf %94, %102 : vector<8x256xf32>
    %c4_70 = arith.constant 4 : index
    %c0_71 = arith.constant 0 : index
    %c0_72 = arith.constant 0 : index
    %104 = vector.load %arg6[%c4_70, %c0_71, %c0_72] : memref<9x8x64xbf16, #tpu.memory_space<vmem>>, vector<1x8x64xbf16>
    %105 = vector.shape_cast %104 : vector<1x8x64xbf16> to vector<8x64xbf16>
    %cst_73 = arith.constant dense<0.000000e+00> : vector<8x256xf32>
    %106 = tpu.matmul %105, %64, %cst_73 {dimension_numbers = #tpu.dot_dimension_numbers<[1], [0], [0], [1], [0, 0, 1, 1], [], []>} : vector<8x64xbf16>, vector<64x256xbf16>, vector<8x256xf32> -> vector<8x256xf32>
    %107 = arith.addf %103, %106 : vector<8x256xf32>
    %c5 = arith.constant 5 : index
    %c0_74 = arith.constant 0 : index
    %c0_75 = arith.constant 0 : index
    %108 = vector.load %arg6[%c5, %c0_74, %c0_75] : memref<9x8x64xbf16, #tpu.memory_space<vmem>>, vector<1x8x64xbf16>
    %109 = vector.shape_cast %108 : vector<1x8x64xbf16> to vector<8x64xbf16>
    %cst_76 = arith.constant dense<0.000000e+00> : vector<8x256xf32>
    %110 = tpu.matmul %109, %64, %cst_76 {dimension_numbers = #tpu.dot_dimension_numbers<[1], [0], [0], [1], [0, 0, 1, 1], [], []>} : vector<8x64xbf16>, vector<64x256xbf16>, vector<8x256xf32> -> vector<8x256xf32>
    %c255_i32 = arith.constant 255 : i32
    %111 = tpu.dynamic_rotate %110 by %c255_i32 dim 1 : vector<8x256xf32>, i32 -> vector<8x256xf32>
    %cst_77 = arith.constant 0.000000e+00 : f32
    %112 = vector.shape_cast %63 : vector<1x256xi1> to vector<1x256xi1>
    %113 = vector.broadcast %112 : vector<1x256xi1> to vector<8x256xi1>
    %114 = vector.broadcast %cst_77 : f32 to vector<8x256xf32>
    %115 = arith.select %113, %111, %114 : vector<8x256xi1>, vector<8x256xf32>
    %116 = arith.addf %107, %115 : vector<8x256xf32>
    %c6 = arith.constant 6 : index
    %c0_78 = arith.constant 0 : index
    %c0_79 = arith.constant 0 : index
    %117 = vector.load %arg6[%c6, %c0_78, %c0_79] : memref<9x8x64xbf16, #tpu.memory_space<vmem>>, vector<1x8x64xbf16>
    %118 = vector.shape_cast %117 : vector<1x8x64xbf16> to vector<8x64xbf16>
    %cst_80 = arith.constant dense<0.000000e+00> : vector<8x256xf32>
    %119 = tpu.matmul %118, %64, %cst_80 {dimension_numbers = #tpu.dot_dimension_numbers<[1], [0], [0], [1], [0, 0, 1, 1], [], []>} : vector<8x64xbf16>, vector<64x256xbf16>, vector<8x256xf32> -> vector<8x256xf32>
    %c241_i32 = arith.constant 241 : i32
    %120 = tpu.dynamic_rotate %119 by %c241_i32 dim 1 : vector<8x256xf32>, i32 -> vector<8x256xf32>
    %121 = arith.andi %59, %61 : vector<1x256xi1>
    %cst_81 = arith.constant 0.000000e+00 : f32
    %122 = vector.shape_cast %121 : vector<1x256xi1> to vector<1x256xi1>
    %123 = vector.broadcast %122 : vector<1x256xi1> to vector<8x256xi1>
    %124 = vector.broadcast %cst_81 : f32 to vector<8x256xf32>
    %125 = arith.select %123, %120, %124 : vector<8x256xi1>, vector<8x256xf32>
    %126 = arith.addf %116, %125 : vector<8x256xf32>
    %c7 = arith.constant 7 : index
    %c0_82 = arith.constant 0 : index
    %c0_83 = arith.constant 0 : index
    %127 = vector.load %arg6[%c7, %c0_82, %c0_83] : memref<9x8x64xbf16, #tpu.memory_space<vmem>>, vector<1x8x64xbf16>
    %128 = vector.shape_cast %127 : vector<1x8x64xbf16> to vector<8x64xbf16>
    %cst_84 = arith.constant dense<0.000000e+00> : vector<8x256xf32>
    %129 = tpu.matmul %128, %64, %cst_84 {dimension_numbers = #tpu.dot_dimension_numbers<[1], [0], [0], [1], [0, 0, 1, 1], [], []>} : vector<8x64xbf16>, vector<64x256xbf16>, vector<8x256xf32> -> vector<8x256xf32>
    %c240_i32 = arith.constant 240 : i32
    %130 = tpu.dynamic_rotate %129 by %c240_i32 dim 1 : vector<8x256xf32>, i32 -> vector<8x256xf32>
    %cst_85 = arith.constant 0.000000e+00 : f32
    %131 = vector.shape_cast %59 : vector<1x256xi1> to vector<1x256xi1>
    %132 = vector.broadcast %131 : vector<1x256xi1> to vector<8x256xi1>
    %133 = vector.broadcast %cst_85 : f32 to vector<8x256xf32>
    %134 = arith.select %132, %130, %133 : vector<8x256xi1>, vector<8x256xf32>
    %135 = arith.addf %126, %134 : vector<8x256xf32>
    %c8 = arith.constant 8 : index
    %c0_86 = arith.constant 0 : index
    %c0_87 = arith.constant 0 : index
    %136 = vector.load %arg6[%c8, %c0_86, %c0_87] : memref<9x8x64xbf16, #tpu.memory_space<vmem>>, vector<1x8x64xbf16>
    %137 = vector.shape_cast %136 : vector<1x8x64xbf16> to vector<8x64xbf16>
    %cst_88 = arith.constant dense<0.000000e+00> : vector<8x256xf32>
    %138 = tpu.matmul %137, %64, %cst_88 {dimension_numbers = #tpu.dot_dimension_numbers<[1], [0], [0], [1], [0, 0, 1, 1], [], []>} : vector<8x64xbf16>, vector<64x256xbf16>, vector<8x256xf32> -> vector<8x256xf32>
    %c239_i32 = arith.constant 239 : i32
    %139 = tpu.dynamic_rotate %138 by %c239_i32 dim 1 : vector<8x256xf32>, i32 -> vector<8x256xf32>
    %140 = arith.andi %59, %63 : vector<1x256xi1>
    %cst_89 = arith.constant 0.000000e+00 : f32
    %141 = vector.shape_cast %140 : vector<1x256xi1> to vector<1x256xi1>
    %142 = vector.broadcast %141 : vector<1x256xi1> to vector<8x256xi1>
    %143 = vector.broadcast %cst_89 : f32 to vector<8x256xf32>
    %144 = arith.select %142, %139, %143 : vector<8x256xi1>, vector<8x256xf32>
    %145 = arith.addf %135, %144 : vector<8x256xf32>
    %c0_90 = arith.constant 0 : index
    %c0_91 = arith.constant 0 : index
    %146 = vector.load %arg7[%c0_90, %c0_91] : memref<8x1xf32, #tpu.memory_space<vmem>>, vector<8x1xf32>
    %147 = vector.broadcast %146 : vector<8x1xf32> to vector<8x256xf32>
    %148 = arith.addf %145, %147 : vector<8x256xf32>
    %c0_92 = arith.constant 0 : index
    %c0_93 = arith.constant 0 : index
    %c0_94 = arith.constant 0 : index
    %149 = vector.load %arg9[%c0_92, %c0_93, %c0_94] : memref<1x8x256xf32, #tpu.memory_space<vmem>>, vector<1x8x256xf32>
    %150 = vector.shape_cast %149 : vector<1x8x256xf32> to vector<8x256xf32>
    %151 = vector.shape_cast %148 : vector<8x256xf32> to vector<1x8x256xf32>
    tpu.vector_store %arg9[%c0_92, %c0_93, %c0_94], %151 {strides = array<i32>} : memref<1x8x256xf32, #tpu.memory_space<vmem>>, vector<1x8x256xf32>,
    return
  }
  func.func @transform_0(%arg0: i32) -> (i32, i32, i32) {
    %c0_i32 = arith.constant 0 : i32
    %c0_i32_0 = arith.constant 0 : i32
    %c0_i32_1 = arith.constant 0 : i32
    return %arg0, %c0_i32, %c0_i32_0 : i32, i32, i32
  }
  func.func @transform_1(%arg0: i32) -> (i32, i32) {
    %c0_i32 = arith.constant 0 : i32
    %c0_i32_0 = arith.constant 0 : i32
    %c0_i32_1 = arith.constant 0 : i32
    return %c0_i32, %c0_i32_0 : i32, i32
  }
  func.func @transform_2(%arg0: i32) -> (i32, i32) {
    %c0_i32 = arith.constant 0 : i32
    %c0_i32_0 = arith.constant 0 : i32
    %c0_i32_1 = arith.constant 0 : i32
    return %c0_i32, %c0_i32_0 : i32, i32
  }
  func.func @transform_3(%arg0: i32) -> (i32, i32) {
    %c0_i32 = arith.constant 0 : i32
    %c0_i32_0 = arith.constant 0 : i32
    %c0_i32_1 = arith.constant 0 : i32
    return %c0_i32, %c0_i32_0 : i32, i32
  }
  func.func @transform_4(%arg0: i32) -> (i32, i32) {
    %c0_i32 = arith.constant 0 : i32
    %c0_i32_0 = arith.constant 0 : i32
    %c0_i32_1 = arith.constant 0 : i32
    return %c0_i32, %c0_i32_0 : i32, i32
  }
  func.func @transform_5(%arg0: i32) -> (i32, i32, i32) {
    %c0_i32 = arith.constant 0 : i32
    %c0_i32_0 = arith.constant 0 : i32
    %c0_i32_1 = arith.constant 0 : i32
    %c0_i32_2 = arith.constant 0 : i32
    return %c0_i32, %c0_i32_0, %c0_i32_1 : i32, i32, i32
  }
  func.func @transform_6(%arg0: i32) -> (i32, i32) {
    %c0_i32 = arith.constant 0 : i32
    %c0_i32_0 = arith.constant 0 : i32
    %c0_i32_1 = arith.constant 0 : i32
    return %c0_i32, %c0_i32_0 : i32, i32
  }
  func.func @transform_7(%arg0: i32) -> (i32, i32) {
    %c0_i32 = arith.constant 0 : i32
    %c0_i32_0 = arith.constant 0 : i32
    %c0_i32_1 = arith.constant 0 : i32
    return %c0_i32, %c0_i32_0 : i32, i32
  }
  func.func @transform_8(%arg0: i32) -> (i32, i32, i32) {
    %c0_i32 = arith.constant 0 : i32
    %c0_i32_0 = arith.constant 0 : i32
    %c0_i32_1 = arith.constant 0 : i32
    return %arg0, %c0_i32, %c0_i32_0 : i32, i32, i32
  }
}

</mosaic_0001>

<bundles_post_ra>
// kernel: tpu_custom_call.1
= control target key start
LH: loop header
LB: loop body
LE: loop exit
PB: predicated region body
PF: predicated region fallthrough
CT: control target
= control target key end

     0   :  { %13 = vsyncpa [#allocation5], 0  ;;  %s3381_s0 = inlined_call_operand.hbm [shape: f32[2,64,256], index: 0, kind: input, shape index: {}]   ;;  %s3382_s1 = inlined_call_operand.vmem [shape: f32[64,1], index: 1, kind: input, shape index: {}]   ;;  %s3383_s2 = inlined_call_operand.vmem [shape: f32[64,1], index: 2, kind: input, shape index: {}]   ;;  %s3384_s3 = inlined_call_operand.vmem [shape: s32[64,1], index: 3, kind: input, shape index: {}]   ;;  %s3385_s4 = inlined_call_operand.vmem [shape: s32[1,64], index: 4, kind: input, shape index: {}]   ;;  %s3386_s5 = inlined_call_operand.vmem [shape: bf16[9,8,64], index: 5, kind: input, shape index: {}]   ;;  %s3387_s6 = inlined_call_operand.vmem [shape: f32[8,1], index: 6, kind: input, shape index: {}]   ;;  %s3388_s7 = inlined_call_operand.vmem [shape: s32[2,256], index: 7, kind: input, shape index: {}]   ;;  %s3389_s8 = inlined_call_operand.hbm [shape: f32[2,8,256], index: 8, kind: output, shape index: {}]  }
   0x1   :  { %15 = vsyncpa [#allocation5 + $0x1], 0 }
   0x2   :  { %16 = vsyncpa [#allocation6], 0 }
   0x3   :  { %18 = vsyncpa [#allocation6 + $0x1], 0  ;;  %s2529_s27 = smov 0   ;;  %s2531_s28 = smov 0  }
   0x4   :  { %s2533_s29 = smov 0   ;;  %s2535_s30 = smov 0  }
   0x5 LB: > { %s2550_s9 = sadd.s32 4294967295, %s2462_s30   ;;  %s1989_s10 = sadd.s32 4294967294, %s2462_s30   ;;  %s2462_s30 = sphi %s2535_s30, %s3430_s30   ;;  %s2458_s29 = sphi %s2533_s29, %s3429_s29   ;;  %s2454_s28 = sphi %s2531_s28, %s3428_s28   ;;  %s2450_s27 = sphi %s2529_s27, %s3427_s27  }
   0x6   : > { %s2554_s11 = sadd.s32 1, %s2462_s30   ;;  %s31_s12 = sadd.s32 1, %s2458_s29 }
   0x7   : > { %s28_s13 = ssub.s32 %s2462_s30, %s2554_s11  ;;  %p38_p0 = scmp.ne.s32.totalorder %s2458_s29, %s2454_s28 }
   0x8   : > { %p29_p1 = scmp.eq.s32.totalorder %s28_s13, 0  ;;  %p39_p2 = scmp.eq.s32.totalorder %s2462_s30, 0 }
   0x9   : > { %p44_p3 = scmp.ne.s32.totalorder %s2454_s28, %s2450_s27  ;;  %p45_p4 = scmp.eq.s32.totalorder %s2550_s9, 0 }
   0xa   : > { %s2566_s14 = scalar_select %p29_p1, %s2458_s29, %s31_s12  }
   0xb   : > { %p2568_p5 = por %p39_p2, %p38_p0  ;;  %p2572_p6 = por %p45_p4, %p44_p3 }
   0xc   : > { %p215_p7 = scmp.eq.s32.totalorder %s2550_s9, 1  ;;  %p221_p8 = scmp.eq.s32.totalorder %s1989_s10, 1 }
   0xd   : > { %p2196_p10 = scmp.lt.s32.totalorder %s2462_s30, 2  ;;  %s262_s19 = sand.u32 1, %s2458_s29  }
   0xe   : > { %p2579_p11 = por %p215_p7, %p38_p0  ;;  %p2583_p12 = por %p221_p8, %p44_p3 }
   0xf   : > { %s2062_s20 = sshll.u32 %s2462_s30, 11  ;;  %s1992_s21 = sshll.u32 %s262_s19, 7 }
  0x10   : > { %s3393_s17 = scalar_select %p2579_p11, 1, 0 }
  0x11   : > { %s3394_s18 = scalar_select %p2583_p12, 1, 0 }
  0x12   : > { %s2592_s24 = scalar_lea.hbm %s3381_s0, %s2062_s20  ;;  %s266_s25 = scalar_lea.vmem [#allocation4], %s1992_s21 }
  0x13   : > { %s273_s26 = sshll.u32 %s266_s25, 4  ;;  %p2596_p13 = pnand %p2196_p10, %p2568_p5  ;;  %s2600_s26 = int_to_ptr.vmem [resolvable:$true] %s273_s26 }
  0x14   : > { %s2602_s12 = scalar_lea.sflag [#allocation5], %s262_s19  ;;  %s2366_s13 = scalar_lea.hbm %s2592_s24, 2048 }
  0x15   : > { %p2367_p0 = scmp.ne.s32.totalorder %s2592_s24, %s2366_s13  ;;  %p2368_p1 = pneg %p2596_p13 }
  0x16   : > { %s2371_s21 = scalar_lea.hbm %s3381_s0, 4096  ;;  %p2372_p4 = scmp.lt.u32.totalorder %s2592_s24, %s3381_s0 }
  0x17   : > { %p2369_p2 = pnand %p2368_p1, %p2367_p0  ;;  %p2373_p5 = scmp.lt.u32.totalorder %s2371_s21, %s2366_s13 }
  0x18   : > { %p2375_p8 = scmp.lt.u32.totalorder %s2366_s13, %s2592_s24 }
  0x19   : > { %p2370_p3 = pneg %p2369_p2  ;;  %p2374_p7 = por %p2373_p5, %p2372_p4 }
  0x1b   : > { %p2376_p10 = por %p2375_p8, %p2374_p7 }
  0x1d   : > { %p2377_p9 = pnand %p2376_p10, %p2370_p3 }
  0x1f   : > { %2380 = shalt.err (!%p2377_p9)
}
  0x20   : > { %s2381_s19 = scalar_lea.vmem %s2600_s26, 2048  ;;  %s2464_s25 = smov [#allocation4]  }
  0x21   : > { %p2382_p0 = scmp.ne.s32.totalorder %s2600_s26, %s2381_s19  ;;  %s2386_s20 = sshll.u32 %s2464_s25, 4  ;;  %s2387_s20 = int_to_ptr.vmem [resolvable:$false] %s2386_s20 }
  0x22   : > { %s2388_s15 = scalar_lea.vmem %s2387_s20, 4096  ;;  %p2389_p11 = scmp.lt.s32.totalorder %s2600_s26, %s2387_s20 }
  0x23   : > { %p2384_p2 = pnand %p2382_p0, %p2368_p1  ;;  %p2390_p4 = scmp.lt.s32.totalorder %s2388_s15, %s2381_s19 }
  0x25   : > { %p2385_p12 = pneg %p2384_p2  ;;  %p2391_p5 = por %p2390_p4, %p2389_p11 }
  0x27   : > { %p2392_p7 = pnand %p2391_p5, %p2385_p12 }
  0x29   : > { %2395 = shalt.err (!%p2392_p7)
}
  0x2a   : > { %s2465_s13 = smov 256   ;;  %s2466_s21 = smov 16  }
  0x2b   : > { %2191 = dma.hbm_to_vmem [thread:$0]  (!%p2596_p13), %s2592_s24, 2048, %s2600_s26, %s2602_s12, %s2465_s13, %s2465_s13, %s2466_s21  }
  0x2c   : > { %p1995_p9 = scmp.ge.s32.totalorder %s2462_s30, 1  ;;  %p281_p1 = scmp.lt.s32.totalorder %s2462_s30, 3 }
  0x2e   : > { %p282_p3 = pnand %p1995_p9, %p281_p1 }
  0x2f   : > { %s2633_s22 = sand.u32 (!%p282_p3), 1, %s2454_s28  }
  0x30   : > { %285 = sbr.rel (%p282_p3) target bundleno = 1970 (0x7b2), region = 52  ;;  %s1996_s23 = sshll.u32 (!%p282_p3), %s2633_s22, 7 }
  0x31   : > { %s288_s19 = scalar_lea.sflag (!%p282_p3), [#allocation5], %s2633_s22  ;;  %s2637_s25 = scalar_lea.vmem (!%p282_p3), [#allocation4], %s1996_s23 }
  0x37   : > { %2441 = dma.done.wait (%p2572_p6), %s288_s19, 2048  }
  0x38   : > { %2443 = vsyncadd (%p2572_p6), %s288_s19, 4294965248  ;;  %v2467_v0 = vmov 0   ;;  %v2646_v1 = vld [vmem:[%s2637_s25 + $0x20] sm:$0xff]  ;;  %v2649_v2 = vld [vmem:[%s2637_s25 + $0x28] sm:$0xff]  ;;  %vm434_vm0 = vcmask 7168   ;;  %v2468_v57 = vmov 0.0  }
  0x39   : > { %2249 = vset.pattern.permute.xlu1 %v2467_v0  ;;  %2248 = vset.pattern.permute.xlu0 %v2467_v0  ;;  %v2652_v3 = vld [vmem:[%s2637_s25] sm:$0xff]  ;;  %v416_v4 = vadd.f32 %v2649_v2, %v2646_v1  ;;  %v2657_v5 = vld [vmem:[%s2637_s25 + $0x8] sm:$0xff]  ;;  %v2660_v6 = vld [vmem:[%s2637_s25 + $0x30] sm:$0xff]  ;;  %vm451_vm2 = vcmask 523264   ;;  %s2470_s13 = smov 2   ;;  %vm613_vm10 = vcmask 23568  }
  0x3a   : > { %v2663_v7 = vld [vmem:[%s2637_s25 + $0x38] sm:$0xff]  ;;  %v410_v8 = vadd.f32 %v2657_v5, %v2652_v3  ;;  %v2668_v9 = vld [vmem:[%s2637_s25 + $0x10] sm:$0xff]  ;;  %v2684_v15 = vld [vmem:[%s2637_s25 + $0x40] sm:$0xff]  ;;  %vm742_vm11 = vcmask 15368   ;;  %s2471_s21 = smov 127   ;;  %s2474_s15 = smov 3  }
  0x3b   : > { %v2671_v10 = vld [vmem:[%s2637_s25 + $0x18] sm:$0xff]  ;;  %417 = vadd.xlane.f32.xlu1 %v416_v4  ;;  %v419_v11 = vadd.f32 %v2663_v7, %v2660_v6  ;;  %v2678_v13 = vld [vmem:[%s2637_s25 + $0x50] sm:$0xff]  ;;  %v2687_v16 = vld [vmem:[%s2637_s25 + $0x48] sm:$0xff]  ;;  %s2475_s10 = smov 4   ;;  %vm976_vm12 = vcmask 31768   ;;  %vm1017_vm13 = vcmask 39968  }
  0x3c   : > { %411 = vadd.xlane.f32.xlu0 %v410_v8  ;;  %v413_v12 = vadd.f32 %v2671_v10, %v2668_v9  ;;  %v2681_v14 = vld [vmem:[%s2637_s25 + $0x58] sm:$0xff]  ;;  %v422_v18 = vadd.f32 %v2687_v16, %v2684_v15  ;;  %v2694_v19 = vld [vmem:[%s2637_s25 + $0x70] sm:$0xff]  ;;  %v2700_v21 = vld [vmem:[%s2637_s25 + $0x60] sm:$0xff]  ;;  %s2476_s12 = smov 17   ;;  %s2477_s20 = smov 16  }
  0x3d   : > { %v425_v17 = vadd.f32 %v2681_v14, %v2678_v13  ;;  %v2697_v20 = vld [vmem:[%s2637_s25 + $0x78] sm:$0xff]  ;;  %v2703_v22 = vld [vmem:[%s2637_s25 + $0x68] sm:$0xff]  ;;  %v327_v26 = vld [vmem:[%s3384_s3 + $0x10] sm:$0xff]  ;;  %s1997_s26 = sshll.u32 %s2633_s22, 4  ;;  %p3424_p11 = scmp.ne.s32.totalorder %s3393_s17, 0 }
  0x3e   : > { %v431_v23 = vadd.f32 %v2697_v20, %v2694_v19  ;;  %v428_v24 = vadd.f32 %v2703_v22, %v2700_v21  ;;  %v326_v25 = vld [vmem:[%s3384_s3 + $0x8] sm:$0xff]  ;;  %v325_v27 = vld [vmem:[%s3384_s3] sm:$0xff]  ;;  %v328_v28 = vld [vmem:[%s3384_s3 + $0x18] sm:$0xff]  ;;  %s2483_s23 = smov [#allocation7]  }
  0x3f   : > { %420 = vadd.xlane.f32.xlu1 %v419_v11  ;;  %v329_v29 = vld [vmem:[%s3384_s3 + $0x20] sm:$0xff]  ;;  %v330_v30 = vld [vmem:[%s3384_s3 + $0x28] sm:$0xff]  ;;  %v331_v31 = vld [vmem:[%s3384_s3 + $0x30] sm:$0xff]  ;;  %s2400_s19 = sshll.u32 %s2483_s23, 4  ;;  %s2401_s19 = int_to_ptr.vmem [resolvable:$false] %s2400_s19 }
  0x40   : > { %414 = vadd.xlane.f32.xlu0 %v413_v12  ;;  %v332_v32 = vld [vmem:[%s3384_s3 + $0x38] sm:$0xff]  ;;  %v1998_v53 = vld [vmem:[%s3385_s4] ss:$0 sm:$0xff]  ;;  %s2402_s16 = scalar_lea.vmem %s2401_s19, 512 }
  0x43   : > { %426 = vadd.xlane.f32.xlu1 %v425_v17 }
  0x44   : > { %423 = vadd.xlane.f32.xlu0 %v422_v18 }
  0x47   : > { %432 = vadd.xlane.f32.xlu1 %v431_v23 }
  0x48   : > { %429 = vadd.xlane.f32.xlu0 %v428_v24 }
  0x58   : > { %338 = vperm.xlu1 %2249, %v326_v25  }
  0x5c   : > { %341 = vperm.xlu1 %2249, %v327_v26  }
  0x5e   : > { %335 = vperm.xlu0 %2248, %v325_v27  }
  0x60   : > { %344 = vperm.xlu1 %2249, %v328_v28  }
  0x64   : > { %347 = vperm.xlu1 %2249, %v329_v29  }
  0x68   : > { %350 = vperm.xlu1 %2249, %v330_v30  }
  0x6c   : > { %353 = vperm.xlu1 %2249, %v331_v31  }
  0x70   : > { %356 = vperm.xlu1 %2249, %v332_v32   ;;  %v2469_v32 = vmov 2  }
  0x71   : > { %2250 = vset.pattern.permute.xlu0 %v2469_v32 }
  0x74   : > { %2251 = vset.pattern.permute.xlu1 %v2469_v32 }
  0xc8   : > { %v418_v33 = vpop.xlane.xlu1 %417 }
  0xc9   : > { %437 = vst.msk [vmem:[#allocation3 + $0x10] sm:$0xff] %vm434_vm0, %v418_v33  ;;  %v412_v34 = vpop.xlane.xlu0 %411 }
  0xca   : > { %435 = vst.msk [vmem:[#allocation3] sm:$0xff] %vm434_vm0, %v412_v34 }
  0xcc   : > { %v421_v35 = vpop.xlane.xlu1 %420 }
  0xcd   : > { %438 = vst.msk [vmem:[#allocation3 + $0x18] sm:$0xff] %vm434_vm0, %v421_v35  ;;  %v415_v36 = vpop.xlane.xlu0 %414 }
  0xce   : > { %436 = vst.msk [vmem:[#allocation3 + $0x8] sm:$0xff] %vm434_vm0, %v415_v36 }
  0xd0   : > { %v427_v37 = vpop.xlane.xlu1 %426  ;;  %v445_v45 = vld [vmem:[#allocation3 + $0x10] sm:$0xff] }
  0xd1   : > { %440 = vst.msk [vmem:[#allocation3 + $0x28] sm:$0xff] %vm434_vm0, %v427_v37  ;;  %v424_v38 = vpop.xlane.xlu0 %423  ;;  %v443_v41 = vld [vmem:[#allocation3] sm:$0xff] }
  0xd2   : > { %439 = vst.msk [vmem:[#allocation3 + $0x20] sm:$0xff] %vm434_vm0, %v424_v38 }
  0xd4   : > { %v433_v39 = vpop.xlane.xlu1 %432  ;;  %v446_v43 = vld [vmem:[#allocation3 + $0x18] sm:$0xff] }
  0xd5   : > { %442 = vst.msk [vmem:[#allocation3 + $0x38] sm:$0xff] %vm434_vm0, %v433_v39  ;;  %v430_v40 = vpop.xlane.xlu0 %429  ;;  %v444_v42 = vld [vmem:[#allocation3 + $0x8] sm:$0xff]  ;;  %v2156_v47 = vpack.c.bf16 %v446_v43, %v445_v45 }
  0xd6   : > { %441 = vst.msk [vmem:[#allocation3 + $0x30] sm:$0xff] %vm434_vm0, %v430_v40  ;;  %v2152_v44 = vpack.c.bf16 %v444_v42, %v443_v41 }
  0xd8   : > { %2153 = vmatprep.subr.bf16.mxu0 %v2152_v44  ;;  %v339_v46 = vpop.permute.xlu1 %338  ;;  %v448_v48 = vld [vmem:[#allocation3 + $0x28] sm:$0xff] }
  0xd9   : > { %2155 = vmatpush3.bf16.msra.mxu0 %v2152_v44  ;;  %v447_v49 = vld [vmem:[#allocation3 + $0x20] sm:$0xff]  ;;  %vm363_vm3 = vcmp.eq.s32.totalorder %v339_v46, %v1998_v53 }
  0xda   : > { %2157 = vmatprep.subr.bf16.mxu0 %v2156_v47  ;;  %v2160_v50 = vpack.c.bf16 %v448_v48, %v447_v49  ;;  %v2000_v61 = vsel %vm363_vm3, 1.0, %v2468_v57 }
  0xdb   : > { %v2746_v4 = vmul.f32 0.001953125, %v2000_v61 }
  0xdc   : > { %v342_v51 = vpop.permute.xlu1 %341  ;;  %v450_v52 = vld [vmem:[#allocation3 + $0x38] sm:$0xff] }
  0xdd   : > { %2159 = vmatpush3.bf16.msra.mxu0 %v2156_v47  ;;  %v449_v54 = vld [vmem:[#allocation3 + $0x30] sm:$0xff]  ;;  %v336_v55 = vpop.permute.xlu0 %335  ;;  %vm364_vm4 = vcmp.eq.s32.totalorder %v342_v51, %v1998_v53 }
  0xde   : > { %2161 = vmatprep.subr.bf16.mxu0 %v2160_v50  ;;  %v2164_v56 = vpack.c.bf16 %v450_v52, %v449_v54  ;;  %vm362_vm1 = vcmp.eq.s32.totalorder %v336_v55, %v1998_v53  ;;  %v2001_v62 = vsel %vm364_vm4, 1.0, %v2468_v57 }
  0xdf   : > { %v1999_v58 = vsel %vm362_vm1, 1.0, %v2468_v57  ;;  %v2748_v8 = vmul.f32 0.001953125, %v2001_v62 }
  0xe0   : > { %v345_v59 = vpop.permute.xlu1 %344  ;;  %v386_v60 = vmul.f32 0.001953125, %v1999_v58 }
  0xe1   : > { %2163 = vmatpush3.bf16.msra.mxu0 %v2160_v50  ;;  %vm365_vm5 = vcmp.eq.s32.totalorder %v345_v59, %v1998_v53 }
  0xe2   : > { %2165 = vmatprep.subr.bf16.mxu0 %v2164_v56  ;;  %2112 = vmatprep.mubr.msk.f32.mxu0 %vm451_vm2, %v386_v60  ;;  %v2002_v11 = vsel %vm365_vm5, 1.0, %v2468_v57 }
  0xe3   : > { %2140 = vmatprep.mubr.msk.f32.mxu1 %vm451_vm2, %v386_v60  ;;  %v2754_v18 = vmul.f32 0.001953125, %v2002_v11 }
  0xe4   : > { %v348_v63 = vpop.permute.xlu1 %347 }
  0xe5   : > { %2167 = vmatpush3.bf16.msra.mxu0 %v2164_v56  ;;  %vm366_vm6 = vcmp.eq.s32.totalorder %v348_v63, %v1998_v53 }
  0xe6   : > { %v2003_v12 = vsel %vm366_vm6, 1.0, %v2468_v57 }
  0xe7   : > { %v2756_v23 = vmul.f32 0.001953125, %v2003_v12 }
  0xe8   : > { %2113 = vmatmul.mubr.msk.f32.vlgmr.msra.gmra.mrb[0].mxu0 %vm451_vm2, %v2746_v4  ;;  %v351_v17 = vpop.permute.xlu1 %350 }
  0xe9   : > { %vm367_vm7 = vcmp.eq.s32.totalorder %v351_v17, %v1998_v53  ;;  %2115 = vmatprep.mubr.msk.f32.mxu0 %vm451_vm2, %v2748_v8 }
  0xea   : > { %v2004_v24 = vsel %vm367_vm7, 1.0, %v2468_v57 }
  0xeb   : > { %v2762_v26 = vmul.f32 0.001953125, %v2004_v24 }
  0xec   : > { %2116 = vmatmul.mubr.msk.f32.gmra.mrb[2].mxu0 %vm451_vm2, %v2754_v18  ;;  %v354_v25 = vpop.permute.xlu1 %353 }
  0xed   : > { %vm368_vm8 = vcmp.eq.s32.totalorder %v354_v25, %v1998_v53  ;;  %2118 = vmatprep.mubr.msk.f32.mxu0 %vm451_vm2, %v2756_v23 }
  0xee   : > { %v2005_v27 = vsel %vm368_vm8, 1.0, %v2468_v57 }
  0xef   : > { %v2764_v28 = vmul.f32 0.001953125, %v2005_v27 }
  0xf0   : > { %2119 = vmatmul.mubr.msk.f32.gmra.mrb[4].mxu0 %vm451_vm2, %v2762_v26  ;;  %v357_v29 = vpop.permute.xlu1 %356 }
  0xf1   : > { %vm369_vm9 = vcmp.eq.s32.totalorder %v357_v29, %v1998_v53  ;;  %2121 = vmatprep.mubr.msk.f32.mxu0 %vm451_vm2, %v2764_v28 }
  0xf2   : > { %v2006_v30 = vsel %vm369_vm9, 1.0, %v2468_v57 }
  0xf3   : > { %v2770_v31 = vmul.f32 0.001953125, %v2006_v30 }
  0xf5   : > { %2122 = vmatmul.mubr.msk.f32.gmra.mrb[6].mxu0 %vm451_vm2, %v2770_v31 }
  0xf6   : > { %1333 = vmatprep.mubr.bf16.mxu0 %v2467_v0 }
 0x1bb   : > { %v2775_v33 = vpop.f32.mrb[0].mxu0 }
 0x1bc   : > { %591 = vrot.lane.b32.xlu0 %v2775_v33, %s2470_s13  ;;  %v2778_v34 = vpop.f32.mrb[1].mxu0 }
 0x1bd   : > { %589 = vrot.lane.b32.xlu1 %v2778_v34, %s2470_s13 }
 0x1bf   : > { %v2781_v35 = vpop.f32.mrb[2].mxu0 }
 0x1c0   : > { %595 = vrot.lane.b32.xlu0 %v2781_v35, %s2470_s13  ;;  %v2784_v36 = vpop.f32.mrb[3].mxu0 }
 0x1c1   : > { %593 = vrot.lane.b32.xlu1 %v2784_v36, %s2470_s13 }
 0x1c3   : > { %v2787_v37 = vpop.f32.mrb[4].mxu0 }
 0x1c4   : > { %599 = vrot.lane.b32.xlu0 %v2787_v37, %s2470_s13  ;;  %v2790_v38 = vpop.f32.mrb[5].mxu0 }
 0x1c5   : > { %597 = vrot.lane.b32.xlu1 %v2790_v38, %s2470_s13 }
 0x1c8   : > { %v2793_v39 = vpop.f32.mrb[6].mxu0 }
 0x1c9   : > { %603 = vrot.lane.b32.xlu0 %v2793_v39, %s2470_s13  ;;  %v2796_v40 = vpop.f32.mrb[7].mxu0 }
 0x1ca   : > { %601 = vrot.lane.b32.xlu1 %v2796_v40, %s2470_s13  ;;  %s2481_s13 = smov 113  }
 0x22e   : > { %v592_v41 = vpop.permute.xlu0 %591 }
 0x22f   : > { %615 = vst.msk [vmem:[#allocation3 + $0x8] sm:$0xff] %vm613_vm10, %v592_v41  ;;  %v590_v42 = vpop.permute.xlu1 %589 }
 0x230   : > { %614 = vst.msk [vmem:[#allocation3] sm:$0xff] %vm613_vm10, %v590_v42 }
 0x232   : > { %v596_v43 = vpop.permute.xlu0 %595 }
 0x233   : > { %617 = vst.msk [vmem:[#allocation3 + $0x18] sm:$0xff] %vm613_vm10, %v596_v43  ;;  %v594_v44 = vpop.permute.xlu1 %593 }
 0x234   : > { %616 = vst.msk [vmem:[#allocation3 + $0x10] sm:$0xff] %vm613_vm10, %v594_v44 }
 0x236   : > { %v600_v45 = vpop.permute.xlu0 %599  ;;  %v639_v46 = vld [vmem:[#allocation3 + $0x8] sm:$0xff] }
 0x237   : > { %619 = vst.msk [vmem:[#allocation3 + $0x28] sm:$0xff] %vm613_vm10, %v600_v45  ;;  %v598_v47 = vpop.permute.xlu1 %597  ;;  %653 = vperm.xlu0 %2250, %v639_v46   ;;  %v638_v48 = vld [vmem:[#allocation3] sm:$0xff] }
 0x238   : > { %618 = vst.msk [vmem:[#allocation3 + $0x20] sm:$0xff] %vm613_vm10, %v598_v47  ;;  %648 = vperm.xlu1 %2251, %v638_v48  }
 0x23a   : > { %v641_v49 = vld [vmem:[#allocation3 + $0x18] sm:$0xff] }
 0x23b   : > { %v604_v50 = vpop.permute.xlu0 %603  ;;  %v640_v53 = vld [vmem:[#allocation3 + $0x10] sm:$0xff] }
 0x23c   : > { %621 = vst.msk [vmem:[#allocation3 + $0x38] sm:$0xff] %vm613_vm10, %v604_v50  ;;  %663 = vperm.xlu1 %2251, %v641_v49   ;;  %v602_v51 = vpop.permute.xlu1 %601 }
 0x23d   : > { %620 = vst.msk [vmem:[#allocation3 + $0x30] sm:$0xff] %vm613_vm10, %v602_v51 }
 0x23e   : > { %v643_v54 = vld [vmem:[#allocation3 + $0x28] sm:$0xff] }
 0x23f   : > { %v642_v52 = vld [vmem:[#allocation3 + $0x20] sm:$0xff] }
 0x240   : > { %668 = vperm.xlu0 %2250, %v642_v52   ;;  %658 = vperm.xlu1 %2251, %v640_v53  }
 0x243   : > { %v645_v56 = vld [vmem:[#allocation3 + $0x38] sm:$0xff] }
 0x244   : > { %673 = vperm.xlu1 %2251, %v643_v54   ;;  %v644_v55 = vld [vmem:[#allocation3 + $0x30] sm:$0xff] }
 0x245   : > { %678 = vperm.xlu0 %2250, %v644_v55  }
 0x248   : > { %683 = vperm.xlu1 %2251, %v645_v56  }
 0x2b6   : > { %v654_v57 = vpop.permute.xlu0 %653 }
 0x2b7   : > { %v688_v58 = vsub.f32 %v2668_v9, %v654_v57  ;;  %v689_v59 = vsub.f32 %v2671_v10, %v654_v57  ;;  %v649_v60 = vpop.permute.xlu1 %648 }
 0x2b8   : > { %v686_v61 = vsub.f32 %v2652_v3, %v649_v60  ;;  %v687_v62 = vsub.f32 %v2657_v5, %v649_v60 }
 0x2b9   : > { %v704_v63 = vmul.f32 %v688_v58, %v688_v58  ;;  %v705_v11 = vmul.f32 %v689_v59, %v689_v59 }
 0x2ba   : > { %v702_v12 = vmul.f32 %v686_v61, %v686_v61  ;;  %v703_v17 = vmul.f32 %v687_v62, %v687_v62 }
 0x2bb   : > { %v664_v24 = vpop.permute.xlu1 %663  ;;  %v721_v25 = vadd.f32 %v705_v11, %v704_v63 }
 0x2bc   : > { %v692_v27 = vsub.f32 %v2660_v6, %v664_v24  ;;  %v693_v29 = vsub.f32 %v2663_v7, %v664_v24  ;;  %v718_v30 = vadd.f32 %v703_v17, %v702_v12 }
 0x2bd   : > { %722 = vadd.xlane.f32.xlu1 %v721_v25 }
 0x2be   : > { %v708_v32 = vmul.f32 %v692_v27, %v692_v27  ;;  %v709_v41 = vmul.f32 %v693_v29, %v693_v29  ;;  %719 = vadd.xlane.f32.xlu0 %v718_v30 }
 0x2bf   : > { %v669_v42 = vpop.permute.xlu0 %668  ;;  %v659_v43 = vpop.permute.xlu1 %658 }
 0x2c0   : > { %v694_v44 = vsub.f32 %v2684_v15, %v669_v42  ;;  %v695_v45 = vsub.f32 %v2687_v16, %v669_v42  ;;  %v690_v46 = vsub.f32 %v2646_v1, %v659_v43  ;;  %v691_v47 = vsub.f32 %v2649_v2, %v659_v43 }
 0x2c1   : > { %v727_v48 = vadd.f32 %v709_v41, %v708_v32 }
 0x2c2   : > { %v710_v49 = vmul.f32 %v694_v44, %v694_v44  ;;  %v711_v50 = vmul.f32 %v695_v45, %v695_v45  ;;  %v706_v51 = vmul.f32 %v690_v46, %v690_v46  ;;  %v707_v52 = vmul.f32 %v691_v47, %v691_v47 }
 0x2c3   : > { %728 = vadd.xlane.f32.xlu0 %v727_v48  ;;  %v674_v53 = vpop.permute.xlu1 %673 }
 0x2c4   : > { %v696_v54 = vsub.f32 %v2678_v13, %v674_v53  ;;  %v697_v55 = vsub.f32 %v2681_v14, %v674_v53  ;;  %v679_v56 = vpop.permute.xlu0 %678  ;;  %v730_v57 = vadd.f32 %v711_v50, %v710_v49  ;;  %v724_v15 = vadd.f32 %v707_v52, %v706_v51 }
 0x2c5   : > { %v698_v16 = vsub.f32 %v2700_v21, %v679_v56  ;;  %v699_v1 = vsub.f32 %v2703_v22, %v679_v56 }
 0x2c6   : > { %v712_v58 = vmul.f32 %v696_v54, %v696_v54  ;;  %v713_v2 = vmul.f32 %v697_v55, %v697_v55  ;;  %731 = vadd.xlane.f32.xlu1 %v730_v57 }
 0x2c7   : > { %v714_v59 = vmul.f32 %v698_v16, %v698_v16  ;;  %v715_v60 = vmul.f32 %v699_v1, %v699_v1  ;;  %725 = vadd.xlane.f32.xlu0 %v724_v15  ;;  %v684_v61 = vpop.permute.xlu1 %683 }
 0x2c8   : > { %v700_v62 = vsub.f32 %v2694_v19, %v684_v61  ;;  %v701_v13 = vsub.f32 %v2697_v20, %v684_v61  ;;  %v733_v63 = vadd.f32 %v713_v2, %v712_v58 }
 0x2c9   : > { %v736_v14 = vadd.f32 %v715_v60, %v714_v59 }
 0x2ca   : > { %v716_v11 = vmul.f32 %v700_v62, %v700_v62  ;;  %v717_v12 = vmul.f32 %v701_v13, %v701_v13 }
 0x2cb   : > { %734 = vadd.xlane.f32.xlu0 %v733_v63  ;;  %737 = vadd.xlane.f32.xlu1 %v736_v14 }
 0x2cc   : > { %v739_v21 = vadd.f32 %v717_v12, %v716_v11 }
 0x2cf   : > { %740 = vadd.xlane.f32.xlu0 %v739_v21 }
 0x34a   : > { %v723_v22 = vpop.xlane.xlu1 %722 }
 0x34b   : > { %744 = vst.msk [vmem:[#allocation3 + $0x8] sm:$0xff] %vm742_vm11, %v723_v22  ;;  %v720_v17 = vpop.xlane.xlu0 %719 }
 0x34c   : > { %743 = vst.msk [vmem:[#allocation3] sm:$0xff] %vm742_vm11, %v720_v17  ;;  %v904_v17 = vld [vmem:[%s3382_s1] sm:$0xff] }
 0x350   : > { %v729_v24 = vpop.xlane.xlu0 %728 }
 0x351   : > { %746 = vst.msk [vmem:[#allocation3 + $0x18] sm:$0xff] %vm742_vm11, %v729_v24 }
 0x352   : > { %v752_v19 = vld [vmem:[#allocation3 + $0x8] sm:$0xff] }
 0x353   : > { %v732_v20 = vpop.xlane.xlu1 %731  ;;  %v751_v25 = vld [vmem:[#allocation3] sm:$0xff] }
 0x354   : > { %v726_v27 = vpop.xlane.xlu0 %725  ;;  %747 = vst.msk [vmem:[#allocation3 + $0x20] sm:$0xff] %vm742_vm11, %v732_v20  ;;  %v2252_v29 = vpack.i.bf16 %v752_v19, %v751_v25  ;;  %v2472_v25 = vmov 3  }
 0x355   : > { %745 = vst.msk [vmem:[#allocation3 + $0x10] sm:$0xff] %vm742_vm11, %v726_v27  ;;  %2272 = vset.pattern.permute.xlu1 %v2472_v25  ;;  %v2473_v27 = vmov 4  }
 0x356   : > { %2253 = vrot.lane.b32.xlu1 %v2252_v29, %s2471_s21  ;;  %2273 = vset.pattern.permute.xlu0 %v2473_v27 }
 0x358   : > { %v735_v30 = vpop.xlane.xlu0 %734  ;;  %v738_v32 = vpop.xlane.xlu1 %737  ;;  %v754_v43 = vld [vmem:[#allocation3 + $0x18] sm:$0xff] }
 0x359   : > { %748 = vst.msk [vmem:[#allocation3 + $0x28] sm:$0xff] %vm742_vm11, %v735_v30  ;;  %749 = vst.msk [vmem:[#allocation3 + $0x30] sm:$0xff] %vm742_vm11, %v738_v32 }
 0x35b   : > { %v755_v45 = vld [vmem:[#allocation3 + $0x20] sm:$0xff] }
 0x35c   : > { %v741_v41 = vpop.xlane.xlu0 %740  ;;  %v753_v42 = vld [vmem:[#allocation3 + $0x10] sm:$0xff] }
 0x35d   : > { %750 = vst.msk [vmem:[#allocation3 + $0x38] sm:$0xff] %vm742_vm11, %v741_v41  ;;  %v2257_v44 = vpack.i.bf16 %v754_v43, %v753_v42  ;;  %v921_v42 = vld [vmem:[%s3383_s2 + $0x8] sm:$0xff]  ;;  %v907_v43 = vld [vmem:[%s3382_s1 + $0x18] sm:$0xff] }
 0x35f   : > { %2258 = vrot.lane.b32.xlu0 %v2257_v44, %s2471_s21 }
 0x360   : > { %v756_v46 = vld [vmem:[#allocation3 + $0x28] sm:$0xff]  ;;  %v757_v48 = vld [vmem:[#allocation3 + $0x30] sm:$0xff] }
 0x361   : > { %v2262_v47 = vpack.i.bf16 %v756_v46, %v755_v45  ;;  %v920_v45 = vld [vmem:[%s3383_s2] sm:$0xff]  ;;  %v906_v46 = vld [vmem:[%s3382_s1 + $0x10] sm:$0xff] }
 0x363   : > { %2263 = vrot.lane.b32.xlu1 %v2262_v47, %s2471_s21 }
 0x364   : > { %v758_v49 = vld [vmem:[#allocation3 + $0x38] sm:$0xff] }
 0x365   : > { %v2267_v50 = vpack.i.bf16 %v758_v49, %v757_v48 }
 0x367   : > { %2268 = vrot.lane.b32.xlu1 %v2267_v50, %s2471_s21 }
 0x3c8   : > { %v2254_v51 = vpop.permute.xlu1 %2253 }
 0x3c9   : > { %v2256_v52 = vunpack.i.h.bf16 %v2254_v51  ;;  %v2255_v53 = vunpack.i.l.bf16 %v2254_v51 }
 0x3cb   : > { %v2168_v54 = vpack.c.bf16 %v2256_v52, %v2255_v53 }
 0x3cd   : > { %2169 = vmatprep.subr.bf16.mxu1 %v2168_v54 }
 0x3ce   : > { %2171 = vmatpush3.bf16.msra.mxu1 %v2168_v54 }
 0x3d1   : > { %v2259_v55 = vpop.permute.xlu0 %2258 }
 0x3d2   : > { %v2261_v56 = vunpack.i.h.bf16 %v2259_v55  ;;  %v2260_v57 = vunpack.i.l.bf16 %v2259_v55  ;;  %v908_v55 = vld [vmem:[%s3382_s1 + $0x20] sm:$0xff] }
 0x3d4   : > { %v2172_v15 = vpack.c.bf16 %v2261_v56, %v2260_v57 }
 0x3d5   : > { %v2264_v16 = vpop.permute.xlu1 %2263 }
 0x3d6   : > { %v2266_v1 = vunpack.i.h.bf16 %v2264_v16  ;;  %v2265_v58 = vunpack.i.l.bf16 %v2264_v16  ;;  %2173 = vmatprep.subr.bf16.mxu1 %v2172_v15  ;;  %v923_v16 = vld [vmem:[%s3383_s2 + $0x18] sm:$0xff] }
 0x3d7   : > { %2175 = vmatpush3.bf16.msra.mxu1 %v2172_v15 }
 0x3d8   : > { %v2176_v2 = vpack.c.bf16 %v2266_v1, %v2265_v58  ;;  %v922_v58 = vld [vmem:[%s3383_s2 + $0x10] sm:$0xff] }
 0x3d9   : > { %v2269_v59 = vpop.permute.xlu1 %2268 }
 0x3da   : > { %v2271_v60 = vunpack.i.h.bf16 %v2269_v59  ;;  %v2270_v61 = vunpack.i.l.bf16 %v2269_v59  ;;  %2177 = vmatprep.subr.bf16.mxu1 %v2176_v2 }
 0x3db   : > { %2179 = vmatpush3.bf16.msra.mxu1 %v2176_v2 }
 0x3dc   : > { %v2180_v62 = vpack.c.bf16 %v2271_v60, %v2270_v61 }
 0x3de   : > { %2181 = vmatprep.subr.bf16.mxu1 %v2180_v62 }
 0x3df   : > { %2183 = vmatpush3.bf16.msra.mxu1 %v2180_v62 }
 0x3e2   : > { %2141 = vmatmul.mubr.msk.f32.vlgmr.msra.gmra.mrb[0].mxu1 %vm451_vm2, %v2746_v4 }
 0x3e3   : > { %2143 = vmatprep.mubr.msk.f32.mxu1 %vm451_vm2, %v2748_v8 }
 0x3e6   : > { %2144 = vmatmul.mubr.msk.f32.gmra.mrb[2].mxu1 %vm451_vm2, %v2754_v18 }
 0x3e7   : > { %2146 = vmatprep.mubr.msk.f32.mxu1 %vm451_vm2, %v2756_v23 }
 0x3ea   : > { %2147 = vmatmul.mubr.msk.f32.gmra.mrb[4].mxu1 %vm451_vm2, %v2762_v26 }
 0x3eb   : > { %2149 = vmatprep.mubr.msk.f32.mxu1 %vm451_vm2, %v2764_v28 }
 0x3ee   : > { %2150 = vmatmul.mubr.msk.f32.gmra.mrb[6].mxu1 %vm451_vm2, %v2770_v31  ;;  %v905_v31 = vld [vmem:[%s3382_s1 + $0x8] sm:$0xff] }
 0x3ef   : > { %1404 = vmatprep.mubr.bf16.mxu1 %v2467_v0 }
 0x4b5   : > { %v2142_v4 = vpop.f32.mrb[0].mxu1 }
 0x4b6   : > { %v863_v13 = vadd.f32 1e-05, %v2142_v4  ;;  %v857_v8 = vpop.f32.mrb[1].mxu1 }
 0x4b7   : > { %v858_v63 = vadd.f32 1e-05, %v857_v8 }
 0x4b8   : > { %2286 = vrsqrt.f32 %v863_v13 }
 0x4b9   : > { %2288 = vrsqrt.f32 %v858_v63  ;;  %v2145_v18 = vpop.f32.mrb[2].mxu1 }
 0x4ba   : > { %v873_v14 = vadd.f32 1e-05, %v2145_v18  ;;  %v867_v23 = vpop.f32.mrb[3].mxu1  ;;  %v925_v18 = vld [vmem:[%s3383_s2 + $0x28] sm:$0xff] }
 0x4bb   : > { %v868_v11 = vadd.f32 1e-05, %v867_v23 }
 0x4bc   : > { %2290 = vrsqrt.f32 %v873_v14 }
 0x4bd   : > { %2292 = vrsqrt.f32 %v868_v11  ;;  %v2148_v26 = vpop.f32.mrb[4].mxu1 }
 0x4be   : > { %v883_v12 = vadd.f32 1e-05, %v2148_v26  ;;  %v877_v28 = vpop.f32.mrb[5].mxu1 }
 0x4bf   : > { %v878_v21 = vadd.f32 1e-05, %v877_v28 }
 0x4c0   : > { %2294 = vrsqrt.f32 %v883_v12 }
 0x4c1   : > { %2296 = vrsqrt.f32 %v878_v21  ;;  %v2151_v22 = vpop.f32.mrb[6].mxu1 }
 0x4c2   : > { %v2287_v24 = vpop.eup %2286  ;;  %v893_v19 = vadd.f32 1e-05, %v2151_v22  ;;  %v887_v20 = vpop.f32.mrb[7].mxu1 }
 0x4c3   : > { %v2289_v29 = vpop.eup %2288  ;;  %v888_v30 = vadd.f32 1e-05, %v887_v20  ;;  %v913_v32 = vmul.f32 %v2287_v24, %v905_v31 }
 0x4c4   : > { %2298 = vrsqrt.f32 %v893_v19  ;;  %v912_v41 = vmul.f32 %v2289_v29, %v904_v17 }
 0x4c5   : > { %2300 = vrsqrt.f32 %v888_v30  ;;  %954 = vrot.lane.b32.xlu1 %v913_v32, %s2474_s15  ;;  %v929_v44 = vmul.f32 %v2775_v33, %v913_v32  ;;  %v909_v33 = vld [vmem:[%s3382_s1 + $0x28] sm:$0xff] }
 0x4c6   : > { %v2291_v47 = vpop.eup %2290  ;;  %952 = vrot.lane.b32.xlu0 %v912_v41, %s2474_s15  ;;  %v928_v48 = vmul.f32 %v912_v41, %v2778_v34 }
 0x4c7   : > { %v2293_v49 = vpop.eup %2292  ;;  %v937_v50 = vsub.f32 %v921_v42, %v929_v44  ;;  %v915_v51 = vmul.f32 %v2291_v47, %v907_v43 }
 0x4c8   : > { %v936_v52 = vsub.f32 %v920_v45, %v928_v48  ;;  %v914_v53 = vmul.f32 %v2293_v49, %v906_v46 }
 0x4c9   : > { %995 = vrot.lane.b32.xlu1 %v937_v50, %s2475_s10  ;;  %v931_v54 = vmul.f32 %v2781_v35, %v915_v51  ;;  %v911_v35 = vld [vmem:[%s3382_s1 + $0x38] sm:$0xff] }
 0x4ca   : > { %v2295_v56 = vpop.eup %2294  ;;  %993 = vrot.lane.b32.xlu0 %v936_v52, %s2475_s10  ;;  %v930_v34 = vmul.f32 %v914_v53, %v2784_v36  ;;  %v910_v36 = vld [vmem:[%s3382_s1 + $0x30] sm:$0xff] }
 0x4cb   : > { %v2297_v57 = vpop.eup %2296  ;;  %v917_v15 = vmul.f32 %v2295_v56, %v909_v33  ;;  %v939_v62 = vsub.f32 %v923_v16, %v931_v54 }
 0x4cc   : > { %v916_v1 = vmul.f32 %v2297_v57, %v908_v55  ;;  %v938_v13 = vsub.f32 %v922_v58, %v930_v34 }
 0x4cd   : > { %958 = vrot.lane.b32.xlu1 %v915_v51, %s2474_s15  ;;  %v933_v2 = vmul.f32 %v2787_v37, %v917_v15 }
 0x4ce   : > { %v2299_v59 = vpop.eup %2298  ;;  %956 = vrot.lane.b32.xlu0 %v914_v53, %s2474_s15  ;;  %v932_v60 = vmul.f32 %v916_v1, %v2790_v38  ;;  %v924_v38 = vld [vmem:[%s3383_s2 + $0x20] sm:$0xff] }
 0x4cf   : > { %v2301_v61 = vpop.eup %2300  ;;  %v919_v4 = vmul.f32 %v2299_v59, %v911_v35  ;;  %v941_v14 = vsub.f32 %v925_v18, %v933_v2 }
 0x4d0   : > { %v918_v8 = vmul.f32 %v2301_v61, %v910_v36  ;;  %v940_v23 = vsub.f32 %v924_v38, %v932_v60 }
 0x4d1   : > { %999 = vrot.lane.b32.xlu1 %v939_v62, %s2475_s10  ;;  %v935_v63 = vmul.f32 %v2793_v39, %v919_v4  ;;  %v927_v39 = vld [vmem:[%s3383_s2 + $0x38] sm:$0xff] }
 0x4d2   : > { %997 = vrot.lane.b32.xlu0 %v938_v13, %s2475_s10  ;;  %v934_v37 = vmul.f32 %v918_v8, %v2796_v40  ;;  %v926_v40 = vld [vmem:[%s3383_s2 + $0x30] sm:$0xff] }
 0x4d3   : > { %v943_v11 = vsub.f32 %v927_v39, %v935_v63  ;;  %v1030_v63 = vld [vmem:[%s2637_s25 + $0x20] sm:$0xff] }
 0x4d4   : > { %v942_v26 = vsub.f32 %v926_v40, %v934_v37  ;;  %v1031_v37 = vld [vmem:[%s2637_s25 + $0x28] sm:$0xff] }
 0x4d5   : > { %962 = vrot.lane.b32.xlu1 %v917_v15, %s2474_s15 }
 0x4d6   : > { %960 = vrot.lane.b32.xlu0 %v916_v1, %s2474_s15 }
 0x4d9   : > { %1003 = vrot.lane.b32.xlu1 %v941_v14, %s2475_s10 }
 0x4da   : > { %1001 = vrot.lane.b32.xlu0 %v940_v23, %s2475_s10 }
 0x4dd   : > { %966 = vrot.lane.b32.xlu1 %v919_v4, %s2474_s15 }
 0x4de   : > { %964 = vrot.lane.b32.xlu0 %v918_v8, %s2474_s15  ;;  %s2478_s15 = smov 15  }
 0x4e1   : > { %1007 = vrot.lane.b32.xlu1 %v943_v11, %s2475_s10  ;;  %v1036_v11 = vld [vmem:[%s2637_s25 + $0x50] sm:$0xff] }
 0x4e2   : > { %1005 = vrot.lane.b32.xlu0 %v942_v26, %s2475_s10  ;;  %s2479_s10 = smov 1  }
 0x537   : > { %v955_v12 = vpop.permute.xlu1 %954 }
 0x538   : > { %978 = vst.msk [vmem:[#allocation3 + $0x8] sm:$0xff] %vm976_vm12, %v955_v12  ;;  %v953_v28 = vpop.permute.xlu0 %952 }
 0x539   : > { %977 = vst.msk [vmem:[#allocation3] sm:$0xff] %vm976_vm12, %v953_v28 }
 0x53b   : > { %v996_v21 = vpop.permute.xlu1 %995 }
 0x53c   : > { %1019 = vst.msk [vmem:[#allocation3 + $0x8] sm:$0xff] %vm1017_vm13, %v996_v21  ;;  %v994_v31 = vpop.permute.xlu0 %993 }
 0x53d   : > { %1018 = vst.msk [vmem:[#allocation3] sm:$0xff] %vm1017_vm13, %v994_v31  ;;  %v1037_v31 = vld [vmem:[%s2637_s25 + $0x58] sm:$0xff] }
 0x53f   : > { %v959_v22 = vpop.permute.xlu1 %958 }
 0x540   : > { %980 = vst.msk [vmem:[#allocation3 + $0x18] sm:$0xff] %vm976_vm12, %v959_v22  ;;  %v957_v17 = vpop.permute.xlu0 %956 }
 0x541   : > { %979 = vst.msk [vmem:[#allocation3 + $0x10] sm:$0xff] %vm976_vm12, %v957_v17 }
 0x543   : > { %v1000_v24 = vpop.permute.xlu1 %999  ;;  %v1043_v19 = vld [vmem:[#allocation3 + $0x8] sm:$0xff] }
 0x544   : > { %1021 = vst.msk [vmem:[#allocation3 + $0x18] sm:$0xff] %vm1017_vm13, %v1000_v24  ;;  %1057 = vperm.xlu1 %2272, %v1043_v19   ;;  %1111 = vperm.xlu0 %2273, %v1043_v19   ;;  %v998_v20 = vpop.permute.xlu0 %997  ;;  %v1042_v32 = vld [vmem:[#allocation3] sm:$0xff] }
 0x545   : > { %1020 = vst.msk [vmem:[#allocation3 + $0x10] sm:$0xff] %vm1017_vm13, %v998_v20  ;;  %v1034_v20 = vld [vmem:[%s2637_s25 + $0x40] sm:$0xff] }
 0x547   : > { %v963_v29 = vpop.permute.xlu1 %962 }
 0x548   : > { %982 = vst.msk [vmem:[#allocation3 + $0x28] sm:$0xff] %vm976_vm12, %v963_v29  ;;  %2275 = vset.pattern.permute.xlu1 %v2473_v27  ;;  %2274 = vset.pattern.permute.xlu0 %v2472_v25  ;;  %v961_v30 = vpop.permute.xlu0 %960  ;;  %v1035_v29 = vld [vmem:[%s2637_s25 + $0x48] sm:$0xff] }
 0x549   : > { %981 = vst.msk [vmem:[#allocation3 + $0x20] sm:$0xff] %vm976_vm12, %v961_v30  ;;  %1107 = vperm.xlu1 %2275, %v1042_v32   ;;  %1052 = vperm.xlu0 %2274, %v1042_v32  }
 0x54b   : > { %v1004_v41 = vpop.permute.xlu1 %1003  ;;  %v1045_v44 = vld [vmem:[#allocation3 + $0x18] sm:$0xff] }
 0x54c   : > { %1023 = vst.msk [vmem:[#allocation3 + $0x28] sm:$0xff] %vm1017_vm13, %v1004_v41  ;;  %v1002_v42 = vpop.permute.xlu0 %1001  ;;  %v1044_v43 = vld [vmem:[#allocation3 + $0x10] sm:$0xff] }
 0x54d   : > { %1022 = vst.msk [vmem:[#allocation3 + $0x20] sm:$0xff] %vm1017_vm13, %v1002_v42  ;;  %2276 = vset.pattern.permute.xlu1 %v2472_v25  ;;  %2279 = vset.pattern.permute.xlu0 %v2473_v27 }
 0x54e   : > { %1067 = vperm.xlu1 %2276, %v1045_v44   ;;  %1115 = vperm.xlu0 %2279, %v1044_v43  }
 0x54f   : > { %v967_v45 = vpop.permute.xlu1 %966 }
 0x550   : > { %984 = vst.msk [vmem:[#allocation3 + $0x38] sm:$0xff] %vm976_vm12, %v967_v45  ;;  %v965_v46 = vpop.permute.xlu0 %964 }
 0x551   : > { %983 = vst.msk [vmem:[#allocation3 + $0x30] sm:$0xff] %vm976_vm12, %v965_v46 }
 0x552   : > { %2277 = vset.pattern.permute.xlu1 %v2473_v27 }
 0x553   : > { %v1008_v47 = vpop.permute.xlu1 %1007  ;;  %1119 = vperm.xlu1 %2277, %v1045_v44   ;;  %v1047_v48 = vld [vmem:[#allocation3 + $0x28] sm:$0xff] }
 0x554   : > { %1025 = vst.msk [vmem:[#allocation3 + $0x38] sm:$0xff] %vm1017_vm13, %v1008_v47  ;;  %1127 = vperm.xlu0 %2279, %v1047_v48   ;;  %v1006_v49 = vpop.permute.xlu0 %1005  ;;  %v1046_v50 = vld [vmem:[#allocation3 + $0x20] sm:$0xff] }
 0x555   : > { %1024 = vst.msk [vmem:[#allocation3 + $0x30] sm:$0xff] %vm1017_vm13, %v1006_v49 }
 0x557   : > { %2278 = vset.pattern.permute.xlu1 %v2472_v25 }
 0x558   : > { %2280 = vset.pattern.permute.xlu0 %v2472_v25  ;;  %1062 = vperm.xlu1 %2278, %v1044_v43  }
 0x559   : > { %1072 = vperm.xlu0 %2280, %v1046_v50  }
 0x55b   : > { %v1049_v52 = vld [vmem:[#allocation3 + $0x38] sm:$0xff] }
 0x55c   : > { %1077 = vperm.xlu1 %2278, %v1047_v48   ;;  %v1048_v51 = vld [vmem:[#allocation3 + $0x30] sm:$0xff] }
 0x55d   : > { %2283 = vset.pattern.permute.xlu0 %v2473_v27 }
 0x55e   : > { %1131 = vperm.xlu0 %2283, %v1048_v51  }
 0x560   : > { %2281 = vset.pattern.permute.xlu1 %v2473_v27 }
 0x561   : > { %1123 = vperm.xlu1 %2281, %v1046_v50  }
 0x562   : > { %2285 = vset.pattern.permute.xlu0 %v2467_v0 }
 0x565   : > { %2282 = vset.pattern.permute.xlu1 %v2472_v25 }
 0x566   : > { %1087 = vperm.xlu1 %2282, %v1049_v52  }
 0x56a   : > { %1082 = vperm.xlu1 %2282, %v1048_v51  }
 0x56e   : > { %2284 = vset.pattern.permute.xlu1 %v2473_v27 }
 0x56f   : > { %1135 = vperm.xlu1 %2284, %v1049_v52  }
 0x5c3   : > { %v1058_v53 = vpop.permute.xlu1 %1057  ;;  %v1112_v33 = vpop.permute.xlu0 %1111 }
 0x5c4   : > { %v1092_v54 = vmul.f32 %v1058_v53, %v2668_v9  ;;  %v1093_v55 = vmul.f32 %v1058_v53, %v2671_v10 }
 0x5c6   : > { %v2954_v56 = vadd.f32 %v1112_v33, %v1092_v54  ;;  %v2956_v34 = vadd.f32 %v1112_v33, %v1093_v55 }
 0x5c8   : > { %v2025_v57 = vmul.f32 -1.442695, %v2954_v56  ;;  %v2026_v25 = vmul.f32 -1.442695, %v2956_v34  ;;  %v1108_v15 = vpop.permute.xlu1 %1107  ;;  %v1053_v16 = vpop.permute.xlu0 %1052 }
 0x5c9   : > { %v1090_v1 = vmul.f32 %v1053_v16, %v2652_v3  ;;  %v1091_v27 = vmul.f32 %v1053_v16, %v2657_v5 }
 0x5ca   : > { %2302 = vpow2.f32 %v2025_v57 }
 0x5cb   : > { %2304 = vpow2.f32 %v2026_v25  ;;  %v2962_v35 = vadd.f32 %v1108_v15, %v1090_v1  ;;  %v2964_v9 = vadd.f32 %v1108_v15, %v1091_v27 }
 0x5cd   : > { %v2023_v10 = vmul.f32 -1.442695, %v2962_v35  ;;  %v2024_v58 = vmul.f32 -1.442695, %v2964_v9  ;;  %v1068_v2 = vpop.permute.xlu1 %1067  ;;  %v1116_v5 = vpop.permute.xlu0 %1115 }
 0x5ce   : > { %v1096_v36 = vmul.f32 %v1068_v2, %v2660_v6  ;;  %v1097_v3 = vmul.f32 %v1068_v2, %v2663_v7  ;;  %v1894_v6 = vld [vmem:[%s3387_s6] sm:$0xff]  ;;  %v1039_v2 = vld [vmem:[%s2637_s25 + $0x68] sm:$0xff] }
 0x5cf   : > { %2306 = vpow2.f32 %v2023_v10  ;;  %1897 = vperm.xlu0 %2285, %v1894_v6  }
 0x5d0   : > { %2308 = vpow2.f32 %v2024_v58  ;;  %v1038_v58 = vld [vmem:[%s2637_s25 + $0x60] sm:$0xff] }
 0x5d2   : > { %v1120_v59 = vpop.permute.xlu1 %1119 }
 0x5d3   : > { %v2970_v60 = vadd.f32 %v1120_v59, %v1096_v36  ;;  %v2972_v61 = vadd.f32 %v1120_v59, %v1097_v3  ;;  %v1128_v38 = vpop.permute.xlu0 %1127 }
 0x5d4   : > { %v2303_v62 = vpop.eup %2302 }
 0x5d5   : > { %v2305_v4 = vpop.eup %2304  ;;  %v1204_v13 = vadd.f32 1.0, %v2303_v62  ;;  %v2029_v8 = vmul.f32 -1.442695, %v2970_v60  ;;  %v2030_v18 = vmul.f32 -1.442695, %v2972_v61 }
 0x5d6   : > { %v1205_v7 = vadd.f32 1.0, %v2305_v4 }
 0x5d7   : > { %v1063_v14 = vpop.permute.xlu1 %1062  ;;  %2310 = vrcp.f32 %v1204_v13 }
 0x5d8   : > { %v1094_v23 = vmul.f32 %v1063_v14, %v1030_v63  ;;  %v1095_v39 = vmul.f32 %v1063_v14, %v1031_v37  ;;  %2312 = vpow2.f32 %v2029_v8  ;;  %v1073_v30 = vpop.permute.xlu0 %1072  ;;  %v1041_v63 = vld [vmem:[%s2637_s25 + $0x78] sm:$0xff] }
 0x5d9   : > { %v2307_v40 = vpop.eup %2306  ;;  %2314 = vpow2.f32 %v2030_v18  ;;  %v1098_v43 = vmul.f32 %v1073_v30, %v1034_v20  ;;  %v1099_v44 = vmul.f32 %v1073_v30, %v1035_v29 }
 0x5da   : > { %v2309_v26 = vpop.eup %2308  ;;  %v1202_v12 = vadd.f32 1.0, %v2307_v40  ;;  %v2982_v28 = vadd.f32 %v1116_v5, %v1094_v23  ;;  %v2984_v21 = vadd.f32 %v1116_v5, %v1095_v39  ;;  %2316 = vrcp.f32 %v1205_v7 }
 0x5db   : > { %v1203_v22 = vadd.f32 1.0, %v2309_v26  ;;  %v1078_v17 = vpop.permute.xlu1 %1077 }
 0x5dc   : > { %2318 = vrcp.f32 %v1202_v12  ;;  %v2027_v24 = vmul.f32 -1.442695, %v2982_v28  ;;  %v2028_v19 = vmul.f32 -1.442695, %v2984_v21  ;;  %v1100_v32 = vmul.f32 %v1078_v17, %v1036_v11 }
 0x5dd   : > { %2320 = vrcp.f32 %v1203_v22  ;;  %v1101_v41 = vmul.f32 %v1078_v17, %v1037_v31 }
 0x5de   : > { %2322 = vpow2.f32 %v2027_v24  ;;  %v2991_v42 = vadd.f32 %v1128_v38, %v1100_v32 }
 0x5df   : > { %2324 = vpow2.f32 %v2028_v19  ;;  %v2993_v45 = vadd.f32 %v1128_v38, %v1101_v41  ;;  %v1132_v38 = vpop.permute.xlu0 %1131 }
 0x5e0   : > { %v2033_v46 = vmul.f32 -1.442695, %v2991_v42  ;;  %v1124_v47 = vpop.permute.xlu1 %1123 }
 0x5e1   : > { %v2034_v48 = vmul.f32 -1.442695, %v2993_v45  ;;  %v2997_v49 = vadd.f32 %v1124_v47, %v1098_v43  ;;  %v2999_v50 = vadd.f32 %v1124_v47, %v1099_v44  ;;  %v2311_v51 = vpop.eup %2310 }
 0x5e2   : > { %2326 = vpow2.f32 %v2033_v46  ;;  %v2313_v52 = vpop.eup %2312  ;;  %v1252_v27 = vmul.f32 %v2311_v51, %v2954_v56 }
 0x5e3   : > { %2328 = vpow2.f32 %v2034_v48  ;;  %v2031_v53 = vmul.f32 -1.442695, %v2997_v49  ;;  %v2315_v33 = vpop.eup %2314  ;;  %v1208_v54 = vadd.f32 1.0, %v2313_v52  ;;  %v2032_v55 = vmul.f32 -1.442695, %v2999_v50 }
 0x5e4   : > { %v2317_v57 = vpop.eup %2316  ;;  %v1209_v25 = vadd.f32 1.0, %v2315_v33 }
 0x5e5   : > { %2330 = vpow2.f32 %v2031_v53  ;;  %v1088_v15 = vpop.permute.xlu1 %1087  ;;  %v1253_v3 = vmul.f32 %v2317_v57, %v2956_v34 }
 0x5e6   : > { %v2319_v16 = vpop.eup %2318  ;;  %2332 = vrcp.f32 %v1208_v54  ;;  %v1105_v39 = vmul.f32 %v1088_v15, %v1041_v63  ;;  %v1297_v63 = vld [vmem:[%s3386_s5] sm:$0xf] }
 0x5e7   : > { %v2321_v1 = vpop.eup %2320  ;;  %v1250_v10 = vmul.f32 %v2319_v16, %v2962_v35  ;;  %2334 = vpow2.f32 %v2032_v55  ;;  %v1040_v35 = vld [vmem:[%s2637_s25 + $0x70] sm:$0xff]  ;;  %s2480_s25 = smov 112  }
 0x5e8   : > { %v2323_v36 = vpop.eup %2322  ;;  %v1251_v5 = vmul.f32 %v2321_v1, %v2964_v9  ;;  %2336 = vrcp.f32 %v1209_v25  ;;  %v1104_v23 = vmul.f32 %v1088_v15, %v1040_v35 }
 0x5e9   : > { %v2325_v59 = vpop.eup %2324  ;;  %v3009_v62 = vpack.c.bf16 %v1252_v27, %v1250_v10  ;;  %v1206_v4 = vadd.f32 1.0, %v2323_v36  ;;  %v1083_v13 = vpop.permute.xlu1 %1082 }
 0x5ea   : > { %v3011_v56 = vpack.c.bf16 %v1253_v3, %v1251_v5  ;;  %v1207_v8 = vadd.f32 1.0, %v2325_v59  ;;  %v1102_v37 = vmul.f32 %v1083_v13, %v1038_v58  ;;  %v1103_v18 = vmul.f32 %v1083_v13, %v1039_v2 }
 0x5eb   : > { %2338 = vrcp.f32 %v1206_v4 }
 0x5ec   : > { %v2327_v6 = vpop.eup %2326  ;;  %2340 = vrcp.f32 %v1207_v8  ;;  %v3015_v34 = vadd.f32 %v1132_v38, %v1102_v37  ;;  %v3017_v9 = vadd.f32 %v1132_v38, %v1103_v18  ;;  %1301 = vmatprep.subr.bf16.mxu0 %v3011_v56  ;;  %1372 = vmatprep.subr.bf16.mxu1 %v3011_v56  ;;  %v2041_v37 = vld [vmem:[%s3386_s5 + $0x4] sm:$0xf]  ;;  %v2043_v18 = vld [vmem:[%s3386_s5 + $0x8] sm:$0xf]  ;;  %v2045_v38 = vld [vmem:[%s3386_s5 + $0xc] sm:$0xf] }
 0x5ed   : > { %v2329_v7 = vpop.eup %2328  ;;  %v1212_v14 = vadd.f32 1.0, %v2327_v6  ;;  %1302 = vmatpush1.bf16.msra.mxu0 %v3009_v62  ;;  %1373 = vmatpush1.bf16.msra.mxu1 %v3009_v62  ;;  %v2047_v6 = vld [vmem:[%s3386_s5 + $0x10] sm:$0xf] }
 0x5ee   : > { %v1213_v40 = vadd.f32 1.0, %v2329_v7  ;;  %v2035_v11 = vmul.f32 -1.442695, %v3015_v34  ;;  %v1136_v26 = vpop.permute.xlu1 %1135  ;;  %v2036_v31 = vmul.f32 -1.442695, %v3017_v9 }
 0x5ef   : > { %v2331_v12 = vpop.eup %2330  ;;  %2342 = vrcp.f32 %v1212_v14  ;;  %v1152_v22 = vadd.f32 %v1136_v26, %v1104_v23  ;;  %v1153_v17 = vadd.f32 %v1136_v26, %v1105_v39  ;;  %v2053_v7 = vld [vmem:[%s3386_s5 + $0x1c] sm:$0xf] }
 0x5f0   : > { %2344 = vrcp.f32 %v1213_v40  ;;  %v1210_v24 = vadd.f32 1.0, %v2331_v12  ;;  %v2333_v19 = vpop.eup %2332 }
 0x5f1   : > { %2346 = vpow2.f32 %v2035_v11  ;;  %v2037_v20 = vmul.f32 -1.442695, %v1152_v22  ;;  %v2335_v29 = vpop.eup %2334  ;;  %v2038_v30 = vmul.f32 -1.442695, %v1153_v17  ;;  %v1256_v46 = vmul.f32 %v2333_v19, %v2970_v60 }
 0x5f2   : > { %2348 = vrcp.f32 %v1210_v24  ;;  %v2337_v32 = vpop.eup %2336  ;;  %v1211_v41 = vadd.f32 1.0, %v2335_v29 }
 0x5f3   : > { %2350 = vpow2.f32 %v2036_v31  ;;  %v1257_v48 = vmul.f32 %v2337_v32, %v2972_v61 }
 0x5f4   : > { %2352 = vpow2.f32 %v2037_v20 }
 0x5f5   : > { %v2339_v43 = vpop.eup %2338  ;;  %2354 = vrcp.f32 %v1211_v41 }
 0x5f6   : > { %v2341_v44 = vpop.eup %2340  ;;  %v1254_v47 = vmul.f32 %v2339_v43, %v2982_v28  ;;  %2356 = vpow2.f32 %v2038_v30 }
 0x5f7   : > { %v1255_v51 = vmul.f32 %v2341_v44, %v2984_v21 }
 0x5f8   : > { %v3029_v52 = vpack.c.bf16 %v1256_v46, %v1254_v47 }
 0x5f9   : > { %v2343_v53 = vpop.eup %2342  ;;  %v3031_v33 = vpack.c.bf16 %v1257_v48, %v1255_v51 }
 0x5fa   : > { %v2345_v54 = vpop.eup %2344  ;;  %v1260_v16 = vmul.f32 %v2343_v53, %v2991_v42 }
 0x5fb   : > { %v2347_v55 = vpop.eup %2346  ;;  %1303 = vmatprep.subr.bf16.mxu0 %v3031_v33  ;;  %1374 = vmatprep.subr.bf16.mxu1 %v3031_v33  ;;  %v1261_v10 = vmul.f32 %v2345_v54, %v2993_v45 }
 0x5fc   : > { %v2349_v57 = vpop.eup %2348  ;;  %v1214_v60 = vadd.f32 1.0, %v2347_v55  ;;  %1304 = vmatpush1.bf16.msra.mxu0 %v3029_v52  ;;  %1375 = vmatpush1.bf16.msra.mxu1 %v3029_v52 }
 0x5fd   : > { %v2351_v61 = vpop.eup %2350  ;;  %v1258_v28 = vmul.f32 %v2349_v57, %v2997_v49 }
 0x5fe   : > { %v2353_v21 = vpop.eup %2352  ;;  %v1215_v25 = vadd.f32 1.0, %v2351_v61  ;;  %2358 = vrcp.f32 %v1214_v60 }
 0x5ff   : > { %v2355_v15 = vpop.eup %2354  ;;  %v1216_v1 = vadd.f32 1.0, %v2353_v21  ;;  %v3041_v2 = vpack.c.bf16 %v1260_v16, %v1258_v28 }
 0x600   : > { %v2357_v27 = vpop.eup %2356  ;;  %v1259_v58 = vmul.f32 %v2355_v15, %v2999_v50  ;;  %2360 = vrcp.f32 %v1215_v25 }
 0x601   : > { %v1217_v36 = vadd.f32 1.0, %v2357_v27  ;;  %2362 = vrcp.f32 %v1216_v1  ;;  %v3169_v27 = vld [vmem:[%s3388_s7] ss:$2 sm:$0x3] }
 0x602   : > { %v3043_v3 = vpack.c.bf16 %v1261_v10, %v1259_v58  ;;  %v3174_v10 = vld [vmem:[%s3388_s7 + $0x1] ss:$2 sm:$0x3]  ;;  %v1346_v58 = vlaneseq  ;;  %vm1285_vm14 = vcmp.ge.s32.totalorder %v3169_v27, 1  ;;  %vm1286_vm6 = vcmp.le.s32.totalorder %v3169_v27, 14 }
 0x603   : > { %2364 = vrcp.f32 %v1217_v36  ;;  %vm1287_vm15 = vcmp.ge.s32.totalorder %v3174_v10, 1  ;;  %vm1288_vm0 = vcmp.le.s32.totalorder %v3174_v10, 14 }
 0x604   : > { %1305 = vmatprep.subr.bf16.mxu0 %v3043_v3  ;;  %1376 = vmatprep.subr.bf16.mxu1 %v3043_v3  ;;  %vm1351_vm1 = vmand %vm1285_vm14, %vm1287_vm15 }
 0x605   : > { %1306 = vmatpush1.bf16.msra.mxu0 %v3041_v2  ;;  %1377 = vmatpush1.bf16.msra.mxu1 %v3041_v2 }
 0x608   : > { %v2359_v42 = vpop.eup %2358 }
 0x609   : > { %v1262_v59 = vmul.f32 %v2359_v42, %v3015_v34  ;;  %v2049_v34 = vld [vmem:[%s3386_s5 + $0x14] sm:$0xf] }
 0x60a   : > { %v2361_v45 = vpop.eup %2360 }
 0x60b   : > { %v2363_v49 = vpop.eup %2362  ;;  %v1263_v4 = vmul.f32 %v2361_v45, %v3017_v9  ;;  %v2051_v9 = vld [vmem:[%s3386_s5 + $0x18] sm:$0xf] }
 0x60c   : > { %v1264_v50 = vmul.f32 %v2363_v49, %v1152_v22  ;;  %v1352_v49 = vsel %vm1351_vm1, 1, %v2467_v0 }
 0x60d   : > { %v2365_v5 = vpop.eup %2364 }
 0x60e   : > { %v1265_v13 = vmul.f32 %v2365_v5, %v1153_v17  ;;  %v3051_v8 = vpack.c.bf16 %v1264_v50, %v1262_v59  ;;  %v1420_v59 = vsel %vm1285_vm14, 1, %v2467_v0 }
 0x610   : > { %v3053_v35 = vpack.c.bf16 %v1265_v13, %v1263_v4  ;;  %v3190_v13 = vand.u32 127, %v1346_v58 }
 0x612   : > { %1307 = vmatprep.subr.bf16.mxu0 %v3053_v35  ;;  %1378 = vmatprep.subr.bf16.mxu1 %v3053_v35  ;;  %vm1417_vm3 = vcmp.lt.s32.totalorder %v3190_v13, 16  ;;  %vm1348_vm4 = vcmp.lt.s32.totalorder %v3190_v13, 17  ;;  %vm1485_vm10 = vcmp.lt.s32.totalorder %v3190_v13, 15  ;;  %vm1554_vm13 = vcmp.lt.s32.totalorder %v3190_v13, 1 }
 0x613   : > { %1308 = vmatpush1.bf16.msra.mxu0 %v3051_v8  ;;  %1379 = vmatpush1.bf16.msra.mxu1 %v3051_v8 }
 0x614   : > { %1440 = vmatprep.subr.bf16.mxu0 %v3011_v56  ;;  %1509 = vmatprep.subr.bf16.mxu1 %v3011_v56 }
 0x616   : > { %2040 = vmatmul.mubr.msk.bf16.vlgmr.msra.gmra.mrb[8].mxu0 %vm451_vm2, %v1297_v63  ;;  %2042 = vmatmul.mubr.msk.bf16.vlgmr.msra.gmra.mrb[8].mxu1 %vm451_vm2, %v2041_v37  ;;  %v1557_v63 = vsel %vm1287_vm15, 1, %v2467_v0 }
 0x617   : > { %1441 = vmatpush1.bf16.msra.mxu0 %v3009_v62  ;;  %1510 = vmatpush1.bf16.msra.mxu1 %v3009_v62 }
 0x618   : > { %1442 = vmatprep.subr.bf16.mxu0 %v3031_v33  ;;  %1511 = vmatprep.subr.bf16.mxu1 %v3031_v33 }
 0x619   : > { %1472 = vmatprep.mubr.bf16.mxu0 %v2467_v0  ;;  %1541 = vmatprep.mubr.bf16.mxu1 %v2467_v0 }
 0x61b   : > { %1443 = vmatpush1.bf16.msra.mxu0 %v3029_v52  ;;  %1512 = vmatpush1.bf16.msra.mxu1 %v3029_v52 }
 0x61c   : > { %1444 = vmatprep.subr.bf16.mxu0 %v3043_v3  ;;  %1513 = vmatprep.subr.bf16.mxu1 %v3043_v3 }
 0x61f   : > { %1445 = vmatpush1.bf16.msra.mxu0 %v3041_v2  ;;  %1514 = vmatpush1.bf16.msra.mxu1 %v3041_v2 }
 0x620   : > { %1446 = vmatprep.subr.bf16.mxu0 %v3053_v35  ;;  %1515 = vmatprep.subr.bf16.mxu1 %v3053_v35 }
 0x623   : > { %1447 = vmatpush1.bf16.msra.mxu0 %v3051_v8  ;;  %1516 = vmatpush1.bf16.msra.mxu1 %v3051_v8 }
 0x624   : > { %1577 = vmatprep.subr.bf16.mxu0 %v3011_v56  ;;  %1625 = vmatprep.subr.bf16.mxu1 %v3011_v56 }
 0x626   : > { %2044 = vmatmul.mubr.msk.bf16.vlgmr.msra.gmra.mrb[12].mxu0 %vm451_vm2, %v2043_v18  ;;  %2046 = vmatmul.mubr.msk.bf16.vlgmr.msra.gmra.mrb[12].mxu1 %vm451_vm2, %v2045_v38 }
 0x627   : > { %1578 = vmatpush1.bf16.msra.mxu0 %v3009_v62  ;;  %1626 = vmatpush1.bf16.msra.mxu1 %v3009_v62 }
 0x628   : > { %1579 = vmatprep.subr.bf16.mxu0 %v3031_v33  ;;  %1627 = vmatprep.subr.bf16.mxu1 %v3031_v33 }
 0x629   : > { %1609 = vmatprep.mubr.bf16.mxu0 %v2467_v0  ;;  %1657 = vmatprep.mubr.bf16.mxu1 %v2467_v0 }
 0x62b   : > { %1580 = vmatpush1.bf16.msra.mxu0 %v3029_v52  ;;  %1628 = vmatpush1.bf16.msra.mxu1 %v3029_v52 }
 0x62c   : > { %1581 = vmatprep.subr.bf16.mxu0 %v3043_v3  ;;  %1629 = vmatprep.subr.bf16.mxu1 %v3043_v3 }
 0x62f   : > { %1582 = vmatpush1.bf16.msra.mxu0 %v3041_v2  ;;  %1630 = vmatpush1.bf16.msra.mxu1 %v3041_v2 }
 0x630   : > { %1583 = vmatprep.subr.bf16.mxu0 %v3053_v35  ;;  %1631 = vmatprep.subr.bf16.mxu1 %v3053_v35 }
 0x633   : > { %1584 = vmatpush1.bf16.msra.mxu0 %v3051_v8  ;;  %1632 = vmatpush1.bf16.msra.mxu1 %v3051_v8 }
 0x634   : > { %1693 = vmatprep.subr.bf16.mxu0 %v3011_v56  ;;  %1762 = vmatprep.subr.bf16.mxu1 %v3011_v56 }
 0x636   : > { %2048 = vmatmul.mubr.msk.bf16.vlgmr.msra.gmra.mrb[16].mxu0 %vm451_vm2, %v2047_v6  ;;  %2050 = vmatmul.mubr.msk.bf16.vlgmr.msra.gmra.mrb[16].mxu1 %vm451_vm2, %v2049_v34 }
 0x637   : > { %1694 = vmatpush1.bf16.msra.mxu0 %v3009_v62  ;;  %1763 = vmatpush1.bf16.msra.mxu1 %v3009_v62 }
 0x638   : > { %1695 = vmatprep.subr.bf16.mxu0 %v3031_v33  ;;  %1764 = vmatprep.subr.bf16.mxu1 %v3031_v33 }
 0x639   : > { %1725 = vmatprep.mubr.bf16.mxu0 %v2467_v0  ;;  %1794 = vmatprep.mubr.bf16.mxu1 %v2467_v0 }
 0x63b   : > { %1696 = vmatpush1.bf16.msra.mxu0 %v3029_v52  ;;  %1765 = vmatpush1.bf16.msra.mxu1 %v3029_v52 }
 0x63c   : > { %1697 = vmatprep.subr.bf16.mxu0 %v3043_v3  ;;  %1766 = vmatprep.subr.bf16.mxu1 %v3043_v3 }
 0x63f   : > { %1698 = vmatpush1.bf16.msra.mxu0 %v3041_v2  ;;  %1767 = vmatpush1.bf16.msra.mxu1 %v3041_v2 }
 0x640   : > { %1699 = vmatprep.subr.bf16.mxu0 %v3053_v35  ;;  %1768 = vmatprep.subr.bf16.mxu1 %v3053_v35 }
 0x643   : > { %1700 = vmatpush1.bf16.msra.mxu0 %v3051_v8  ;;  %1769 = vmatpush1.bf16.msra.mxu1 %v3051_v8 }
 0x644   : > { %1830 = vmatprep.subr.bf16.mxu0 %v3011_v56  ;;  %v2055_v56 = vld [vmem:[%s3386_s5 + $0x20] sm:$0xf] }
 0x646   : > { %2052 = vmatmul.mubr.msk.bf16.vlgmr.msra.gmra.mrb[20].mxu0 %vm451_vm2, %v2051_v9  ;;  %2054 = vmatmul.mubr.msk.bf16.vlgmr.msra.gmra.mrb[20].mxu1 %vm451_vm2, %v2053_v7 }
 0x647   : > { %1831 = vmatpush1.bf16.msra.mxu0 %v3009_v62  ;;  %1862 = vmatprep.mubr.bf16.mxu0 %v2467_v0 }
 0x648   : > { %1832 = vmatprep.subr.bf16.mxu0 %v3031_v33 }
 0x64b   : > { %1833 = vmatpush1.bf16.msra.mxu0 %v3029_v52 }
 0x64c   : > { %1834 = vmatprep.subr.bf16.mxu0 %v3043_v3  ;;  %v1354_v3 = vshrl.u32 %v1346_v58, 7 }
 0x64e   : > { %v3164_v1 = vpop.permute.xlu0 %1897  ;;  %v3181_v45 = vsub.s32 0, %v1354_v3  ;;  %v3186_v50 = vsub.s32 1, %v1354_v3 }
 0x64f   : > { %1835 = vmatpush1.bf16.msra.mxu0 %v3041_v2 }
 0x650   : > { %1836 = vmatprep.subr.bf16.mxu0 %v3053_v35  ;;  %v1360_v37 = vrot.slane %v1352_v49, %v3186_v50  ;;  %v1424_v18 = vrot.slane %v1420_v59, %v3181_v45  ;;  %v1428_v38 = vrot.slane %v1420_v59, %v3186_v50  ;;  %v1561_v7 = vrot.slane %v1557_v63, %v3181_v45 }
 0x652   : > { %vm3210_vm7 = vcmp.eq.s32.totalorder %v1360_v37, 1  ;;  %vm3214_vm8 = vcmp.eq.s32.totalorder %v1424_v18, 1  ;;  %vm3218_vm9 = vcmp.eq.s32.totalorder %v1428_v38, 1 }
 0x653   : > { %1837 = vmatpush1.bf16.msra.mxu0 %v3051_v8  ;;  %v1356_v8 = vrot.slane %v1352_v49, %v3181_v45 }
 0x655   : > { %vm3205_vm5 = vcmp.eq.s32.totalorder %v1356_v8, 1 }
 0x656   : > { %2056 = vmatmul.mubr.msk.bf16.vlgmr.msra.gmra.mrb[24].mxu0 %vm451_vm2, %v2055_v56  ;;  %vm1488_vm2 = vmand %vm1285_vm14, %vm1288_vm0  ;;  %v1565_v56 = vrot.slane %v1557_v63, %v3186_v50  ;;  %vm3235_vm14 = vcmp.eq.s32.totalorder %v1561_v7, 1 }
 0x657   : > { %v1489_v4 = vsel %vm1488_vm2, 1, %v2467_v0  ;;  %vm1741_vm2 = vmand %vm1286_vm6, %vm1287_vm15  ;;  %vm1670_vm15 = vcmp.lt.s32.totalorder %v3190_v13, 127 }
 0x658   : > { %v1493_v34 = vrot.slane %v1489_v4, %v3181_v45  ;;  %v1497_v9 = vrot.slane %v1489_v4, %v3186_v50  ;;  %vm3239_vm1 = vcmp.eq.s32.totalorder %v1565_v56, 1 }
 0x65a   : > { %vm3223_vm11 = vcmp.eq.s32.totalorder %v1493_v34, 1  ;;  %vm3230_vm12 = vcmp.eq.s32.totalorder %v1497_v9, 1 }
 0x6e9   : > { %v1335_v62 = vpop.f32.mrb[8].mxu0  ;;  %v1406_v14 = vpop.f32.mrb[8].mxu1 }
 0x6ea   : > { %v1337_v23 = vpop.f32.mrb[9].mxu0  ;;  %1342 = vrot.lane.b32.xlu0 %v1335_v62, %s2476_s12  ;;  %v1408_v39 = vpop.f32.mrb[9].mxu1 }
 0x6eb   : > { %1344 = vrot.lane.b32.xlu1 %v1337_v23, %s2476_s12  ;;  %v1339_v40 = vpop.f32.mrb[10].mxu0  ;;  %v1410_v11 = vpop.f32.mrb[10].mxu1  ;;  %s2063_s12 = sshll.u32 %s2550_s9, 8  ;;  %s1905_s9 = scalar_lea.sflag [#allocation6], %s2633_s22 }
 0x6ec   : > { %v1340_v26 = vpop.f32.mrb[11].mxu0  ;;  %v1411_v12 = vpop.f32.mrb[11].mxu1 }
 0x6ee   : > { %1413 = vrot.lane.b32.xlu0 %v1406_v14, %s2477_s20 }
 0x6ef   : > { %1415 = vrot.lane.b32.xlu1 %v1408_v39, %s2477_s20  ;;  %s323_s20 = scalar_lea.vmem [#allocation7], %s1997_s26 }
 0x6f9   : > { %v1474_v31 = vpop.f32.mrb[12].mxu0  ;;  %v1543_v22 = vpop.f32.mrb[12].mxu1 }
 0x6fa   : > { %v1476_v17 = vpop.f32.mrb[13].mxu0  ;;  %1481 = vrot.lane.b32.xlu0 %v1474_v31, %s2478_s15  ;;  %v1545_v24 = vpop.f32.mrb[13].mxu1  ;;  %v1673_v31 = vsel %vm1288_vm0, 1, %v2467_v0 }
 0x6fb   : > { %1483 = vrot.lane.b32.xlu1 %v1476_v17, %s2478_s15  ;;  %v1478_v19 = vpop.f32.mrb[14].mxu0  ;;  %v1547_v20 = vpop.f32.mrb[14].mxu1  ;;  %s1919_s15 = sshll.u32 %s323_s20, 4  ;;  %s3339_s15 = int_to_ptr.vmem [resolvable:$true] %s1919_s15 }
 0x6fc   : > { %v1479_v29 = vpop.f32.mrb[15].mxu0  ;;  %v1548_v30 = vpop.f32.mrb[15].mxu1  ;;  %p2403_p8 = scmp.lt.s32.totalorder %s3339_s15, %s2401_s19 }
 0x6fe   : > { %1550 = vrot.lane.b32.xlu0 %v1543_v22, %s2479_s10 }
 0x6ff   : > { %1552 = vrot.lane.b32.xlu1 %v1545_v24, %s2479_s10 }
 0x709   : > { %v3158_v32 = vpop.f32.mrb[16].mxu0  ;;  %v1659_v41 = vpop.f32.mrb[16].mxu1 }
 0x70a   : > { %v3160_v43 = vpop.f32.mrb[17].mxu0  ;;  %v1661_v44 = vpop.f32.mrb[17].mxu1  ;;  %1666 = vrot.lane.b32.xlu0 %v1659_v41, %s2471_s21 }
 0x70b   : > { %1668 = vrot.lane.b32.xlu1 %v1661_v44, %s2471_s21  ;;  %v1615_v46 = vpop.f32.mrb[18].mxu0  ;;  %v1663_v47 = vpop.f32.mrb[18].mxu1  ;;  %s2482_s21 = smov 111  }
 0x70c   : > { %v1616_v48 = vpop.f32.mrb[19].mxu0  ;;  %v1664_v51 = vpop.f32.mrb[19].mxu1 }
 0x70d   : > { %v1677_v48 = vrot.slane %v1673_v31, %v3181_v45  ;;  %v1681_v51 = vrot.slane %v1673_v31, %v3186_v50 }
 0x719   : > { %v1727_v52 = vpop.f32.mrb[20].mxu0  ;;  %v1796_v53 = vpop.f32.mrb[20].mxu1 }
 0x71a   : > { %1803 = vrot.lane.b32.xlu1 %v1796_v53, %s2480_s25  ;;  %v1729_v33 = vpop.f32.mrb[21].mxu0  ;;  %1734 = vrot.lane.b32.xlu0 %v1727_v52, %s2481_s13  ;;  %v1798_v54 = vpop.f32.mrb[21].mxu1 }
 0x71b   : > { %v1731_v55 = vpop.f32.mrb[22].mxu0  ;;  %v1800_v57 = vpop.f32.mrb[22].mxu1 }
 0x71c   : > { %v1732_v60 = vpop.f32.mrb[23].mxu0  ;;  %v1801_v61 = vpop.f32.mrb[23].mxu1 }
 0x71e   : > { %1736 = vrot.lane.b32.xlu1 %v1729_v33, %s2481_s13  ;;  %v1742_v33 = vsel %vm1741_vm2, 1, %v2467_v0  ;;  %s3337_s13 = scalar_lea.hbm %s3389_s8, %s2063_s12 }
 0x722   : > { %1805 = vrot.lane.b32.xlu1 %v1798_v54, %s2480_s25  ;;  %v1810_v54 = vsel %vm1286_vm6, 1, %v2467_v0 }
 0x723   : > { %v1814_v49 = vrot.slane %v1810_v54, %v3181_v45  ;;  %v1818_v10 = vrot.slane %v1810_v54, %v3186_v50 }
 0x729   : > { %v1864_v28 = vpop.f32.mrb[24].mxu0 }
 0x72a   : > { %1871 = vrot.lane.b32.xlu0 %v1864_v28, %s2482_s21  ;;  %v1866_v21 = vpop.f32.mrb[25].mxu0 }
 0x72b   : > { %1873 = vrot.lane.b32.xlu1 %v1866_v21, %s2482_s21  ;;  %v1868_v25 = vpop.f32.mrb[26].mxu0  ;;  %s2396_s21 = scalar_lea.vmem %s3339_s15, 256 }
 0x72c   : > { %v1869_v15 = vpop.f32.mrb[27].mxu0  ;;  %p2397_p6 = scmp.ne.s32.totalorder %s3339_s15, %s2396_s21  ;;  %p2404_p10 = scmp.lt.s32.totalorder %s2402_s16, %s2396_s21 }
 0x72e   : > { %p2398_p12 = pnand %p2397_p6, %p3424_p11  ;;  %p2405_p0 = por %p2404_p10, %p2403_p8 }
 0x730   : > { %p2399_p13 = pneg %p2398_p12 }
 0x732   : > { %p2406_p2 = pnand %p2405_p0, %p2399_p13 }
 0x75c   : > { %v1343_v36 = vpop.permute.xlu0 %1342 }
 0x75d   : > { %v1345_v16 = vpop.permute.xlu1 %1344 }
 0x75e   : > { %v1349_v20 = vsel %vm1348_vm4, %v1343_v36, %v1345_v16  ;;  %v1350_v29 = vsel %vm1348_vm4, %v1345_v16, %v1343_v36  ;;  %v1750_v36 = vrot.slane %v1742_v33, %v3186_v50  ;;  %vm3282_vm4 = vcmp.eq.s32.totalorder %v1677_v48, 1 }
 0x75f   : > { %v1363_v55 = vsel %vm3205_vm5, %v1350_v29, 0.0  ;;  %v1364_v57 = vsel %vm3210_vm7, %v1349_v20, 0.0  ;;  %vm1738_vm5 = vcmp.lt.s32.totalorder %v3190_v13, 113 }
 0x760   : > { %v1414_v5 = vpop.permute.xlu0 %1413  ;;  %vm3300_vm7 = vcmp.eq.s32.totalorder %v1750_v36, 1 }
 0x761   : > { %v1416_v2 = vpop.permute.xlu1 %1415 }
 0x762   : > { %v1418_v11 = vsel %vm1417_vm3, %v1414_v5, %v1416_v2  ;;  %v1419_v26 = vsel %vm1417_vm3, %v1416_v2, %v1414_v5  ;;  %vm1878_vm3 = vmand %vm1286_vm6, %vm1288_vm0  ;;  %v1746_v2 = vrot.slane %v1742_v33, %v3181_v45  ;;  %vm3286_vm0 = vcmp.eq.s32.totalorder %v1681_v51, 1 }
 0x763   : > { %v1431_v46 = vsel %vm3214_vm8, %v1419_v26, 0.0  ;;  %v1432_v47 = vsel %vm3218_vm9, %v1418_v11, 0.0  ;;  %v1879_v59 = vsel %vm1878_vm3, 1, %v2467_v0  ;;  %vm1807_vm8 = vcmp.lt.s32.totalorder %v3190_v13, 112 }
 0x764   : > { %v1433_v28 = vadd.f32 %v1431_v46, %v1363_v55  ;;  %v1434_v21 = vadd.f32 %v1432_v47, %v1364_v57  ;;  %vm3296_vm6 = vcmp.eq.s32.totalorder %v1746_v2, 1  ;;  %vm3305_vm9 = vcmp.eq.s32.totalorder %v1814_v49, 1 }
 0x765   : > { %v1887_v23 = vrot.slane %v1879_v59, %v3186_v50 }
 0x76c   : > { %v1482_v6 = vpop.permute.xlu0 %1481 }
 0x76d   : > { %v1484_v42 = vpop.permute.xlu1 %1483 }
 0x76e   : > { %v1486_v30 = vsel %vm1485_vm10, %v1482_v6, %v1484_v42  ;;  %v1487_v41 = vsel %vm1485_vm10, %v1484_v42, %v1482_v6  ;;  %vm3309_vm10 = vcmp.eq.s32.totalorder %v1818_v10, 1 }
 0x76f   : > { %v1500_v60 = vsel %vm3223_vm11, %v1487_v41, 0.0  ;;  %v1501_v61 = vsel %vm3230_vm12, %v1486_v30, 0.0  ;;  %vm1875_vm11 = vcmp.lt.s32.totalorder %v3190_v13, 111 }
 0x770   : > { %v1551_v19 = vpop.permute.xlu0 %1550  ;;  %v1502_v3 = vadd.f32 %v1500_v60, %v1433_v28  ;;  %v1503_v42 = vadd.f32 %v1501_v61, %v1434_v21 }
 0x771   : > { %v1553_v35 = vpop.permute.xlu1 %1552 }
 0x772   : > { %v1555_v52 = vsel %vm1554_vm13, %v1551_v19, %v1553_v35  ;;  %v1556_v53 = vsel %vm1554_vm13, %v1553_v35, %v1551_v19  ;;  %vm1889_vm13 = vcmp.eq.s32.totalorder %v1887_v23, 1 }
 0x773   : > { %v1568_v15 = vsel %vm3235_vm14, %v1556_v53, 0.0  ;;  %v1569_v16 = vsel %vm3239_vm1, %v1555_v52, 0.0 }
 0x774   : > { %v1570_v4 = vadd.f32 %v1568_v15, %v1502_v3  ;;  %v1571_v8 = vadd.f32 %v1569_v16, %v1503_v42 }
 0x776   : > { %v1618_v39 = vadd.f32 %v3158_v32, %v1570_v4  ;;  %v1619_v40 = vadd.f32 %v3160_v43, %v1571_v8 }
 0x77c   : > { %v1667_v58 = vpop.permute.xlu0 %1666 }
 0x77d   : > { %v1669_v14 = vpop.permute.xlu1 %1668 }
 0x77e   : > { %v1671_v35 = vsel %vm1670_vm15, %v1667_v58, %v1669_v14  ;;  %v1672_v63 = vsel %vm1670_vm15, %v1669_v14, %v1667_v58  ;;  %v1883_v14 = vrot.slane %v1879_v59, %v3181_v45 }
 0x77f   : > { %v1684_v56 = vsel %vm3282_vm4, %v1671_v35, 0.0  ;;  %v1685_v62 = vsel %vm3286_vm0, %v1672_v63, 0.0 }
 0x780   : > { %v1686_v22 = vadd.f32 %v1684_v56, %v1618_v39  ;;  %v1687_v17 = vadd.f32 %v1685_v62, %v1619_v40  ;;  %vm1888_vm12 = vcmp.eq.s32.totalorder %v1883_v14, 1 }
 0x78c   : > { %v1804_v44 = vpop.permute.xlu1 %1803  ;;  %v1735_v37 = vpop.permute.xlu0 %1734 }
 0x790   : > { %v1737_v25 = vpop.permute.xlu1 %1736 }
 0x791   : > { %v1739_v6 = vsel %vm1738_vm5, %v1735_v37, %v1737_v25  ;;  %v1740_v34 = vsel %vm1738_vm5, %v1737_v25, %v1735_v37 }
 0x792   : > { %v1753_v12 = vsel %vm3296_vm6, %v1739_v6, 0.0  ;;  %v1754_v31 = vsel %vm3300_vm7, %v1740_v34, 0.0 }
 0x793   : > { %v1755_v43 = vadd.f32 %v1753_v12, %v1686_v22  ;;  %v1756_v50 = vadd.f32 %v1754_v31, %v1687_v17 }
 0x794   : > { %v1806_v0 = vpop.permute.xlu1 %1805 }
 0x795   : > { %v1808_v11 = vsel %vm1807_vm8, %v1804_v44, %v1806_v0  ;;  %v1809_v26 = vsel %vm1807_vm8, %v1806_v0, %v1804_v44 }
 0x796   : > { %v1821_v45 = vsel %vm3305_vm9, %v1808_v11, 0.0  ;;  %v1822_v32 = vsel %vm3309_vm10, %v1809_v26, 0.0 }
 0x797   : > { %v1823_v20 = vadd.f32 %v1821_v45, %v1755_v43  ;;  %v1824_v29 = vadd.f32 %v1822_v32, %v1756_v50 }
 0x79c   : > { %v1872_v24 = vpop.permute.xlu0 %1871 }
 0x79d   : > { %v1874_v19 = vpop.permute.xlu1 %1873 }
 0x79e   : > { %v1876_v30 = vsel %vm1875_vm11, %v1872_v24, %v1874_v19  ;;  %v1877_v41 = vsel %vm1875_vm11, %v1874_v19, %v1872_v24 }
 0x79f   : > { %v1890_v44 = vsel %vm1888_vm12, %v1876_v30, 0.0  ;;  %v1891_v46 = vsel %vm1889_vm13, %v1877_v41, 0.0 }
 0x7a0   : > { %v1892_v47 = vadd.f32 %v1890_v44, %v1823_v20  ;;  %v1893_v48 = vadd.f32 %v1891_v46, %v1824_v29 }
 0x7a2   : > { %v1900_v13 = vadd.f32 %v3164_v1, %v1892_v47  ;;  %v1901_v51 = vadd.f32 %v3164_v1, %v1893_v48 }
 0x7a4   : > { %1902 = vst [vmem:[%s323_s20] sm:$0xff] %v1900_v13  ;;  %1903 = vst [vmem:[%s323_s20 + $0x8] sm:$0xff] %v1901_v51 }
 0x7a5   : > { %2409 = shalt.err (!%p2406_p2)
}
 0x7a6   : > { %s2410_s22 = scalar_lea.hbm %s3337_s13, 256  ;;  %s2414_s12 = scalar_lea.hbm %s3389_s8, 512 }
 0x7a7   : > { %p2411_p4 = scmp.ne.s32.totalorder %s3337_s13, %s2410_s22  ;;  %p2415_p9 = scmp.lt.u32.totalorder %s3337_s13, %s3389_s8 }
 0x7a8   : > { %p2416_p1 = scmp.lt.u32.totalorder %s2414_s12, %s2410_s22  ;;  %p2418_p6 = scmp.lt.u32.totalorder %s2410_s22, %s3337_s13 }
 0x7a9   : > { %p2412_p5 = pnand %p2411_p4, %p3424_p11 }
 0x7aa   : > { %p2417_p3 = por %p2416_p1, %p2415_p9 }
 0x7ab   : > { %p2413_p7 = pneg %p2412_p5 }
 0x7ac   : > { %p2419_p12 = por %p2418_p6, %p2417_p3 }
 0x7ae   : > { %p2420_p13 = pnand %p2419_p12, %p2413_p7 }
 0x7b0   : > { %2423 = shalt.err (!%p2420_p13)
}
 0x7b1   : > { %2186 = dma.vmem_to_hbm [thread:$0]  (%p3424_p11), %s3339_s15, 256, %s3337_s13, %s1905_s9  }
 0x7b2 PF: > { %s1931_s25 = sand.u32 1, %s2450_s27   ;;  %p3425_p8 = scmp.ne.s32.totalorder %s3394_s18, 0 }
 0x7b3   : > { %p3426_p10 = scmp.ge.s32.totalorder %s2462_s30, 2  ;;  %s1932_s21 = scalar_lea.sflag [#allocation6], %s1931_s25 }
 0x7b5   : > { %p2193_p0 = pnand %p3426_p10, %p3425_p8 }
 0x7b7   : > { %2445 = dma.done.wait (!%p2193_p0), %s1932_s21, 256  }
 0x7b8   : > { %2447 = vsyncadd (!%p2193_p0), %s1932_s21, 4294967040  ;;  %p21_p2 = scmp.ge.s32.totalorder %s2554_s11, 4   ;;  %s3427_s27 = smov %s2454_s28 }
 0x7b9   : > { %s3428_s28 = smov %s2458_s29  ;;  %s3429_s29 = smov %s2566_s14 }
 0x7ba   : > { %s3430_s30 = smov %s2554_s11  ;;  %23 = sbr.rel (!%p21_p2) target bundleno = 5 (0x5), region = 106 }
 0x7c1   :  { %1937 = vsyncpa [#allocation5], 1 }
 0x7c2   :  { %1939 = vsyncpa [#allocation5 + $0x1], 1 }
 0x7c3   :  { %1940 = vsyncpa [#allocation6], 1 }
 0x7c4   :  { %1942 = vsyncpa [#allocation6 + $0x1], 1 }

</bundles_post_ra>
